<compile_context>
chip_gen: v5e
topology: v5e:2x2
jax: 0.10.0
libtpu: 0.0.40
codegen_flags: <defaults>
</compile_context>

<pallas_src>
import functools

import jax
import jax.numpy as jnp
from jax import lax
from jax.experimental import pallas as pl
from jax.experimental.pallas import tpu as pltpu


def make_bilstm_kernel(num_layers, T, Bp, I, H, Cp):
    G = 4 * H

    def kernel(*refs):
        # ---- parse refs: x, per-layer params, fc params, output, scratch ----
        idx = 0
        x_ref = refs[idx]; idx += 1                         # (T*Bp, I) bf16
        layers = []
        for _l in range(num_layers):
            # (wih_f (in,4H) bf16, bias_f (1,4H) f32, wih_b, bias_b, whh_bd (2H,8H) bf16)
            layers.append(tuple(refs[idx:idx + 5]))
            idx += 5
        wfc_f_ref = refs[idx]; wfc_b_ref = refs[idx + 1]; bfc_ref = refs[idx + 2]
        idx += 3
        out_ref = refs[idx]; idx += 1                       # (Bp, Cp) f32
        gx_ref = refs[idx]; seq_ref = refs[idx + 1]         # (T*Bp, 8H) f32, (T*Bp, 2H) f32

        # Hoisted per-lane constants for sigmoid-via-tanh (weights pre-scaled by 0.5
        # on i/f/o columns): i/f/o lanes -> 0.5*tanh + 0.5 == sigmoid; g lanes -> tanh.
        lane = lax.broadcasted_iota(jnp.int32, (Bp, 2 * G), 1)
        lg = lane % G
        is_g = (lg >= 2 * H) & (lg < 3 * H)
        scale8 = jnp.where(is_g, jnp.float32(1.0), jnp.float32(0.5))
        off8 = jnp.where(is_g, jnp.float32(0.0), jnp.float32(0.5))
        scale4 = scale8[:, :G]
        off4 = off8[:, :G]

        def lstm_cell(act, c, base):
            # act lanes [base, base+4H) hold activated (i, f, g, o) of one direction.
            i_g = act[:, base + 0 * H: base + 1 * H]
            f_g = act[:, base + 1 * H: base + 2 * H]
            g_g = act[:, base + 2 * H: base + 3 * H]
            o_g = act[:, base + 3 * H: base + 4 * H]
            c_new = f_g * c + i_g * g_g
            h_new = o_g * jnp.tanh(c_new)
            return h_new, c_new

        # ---------- non-top layers: interleaved bidirectional recurrence ----------
        for l in range(num_layers - 1):
            wih_f, bias_f, wih_b, bias_b, whh_bd_ref = layers[l]
            xin = x_ref[...] if l == 0 else seq_ref[...].astype(jnp.bfloat16)

            # Hoisted input projections (one batched MXU matmul per direction),
            # bias folded in once.  Forward gates stored in natural time order.
            gx_ref[:, 0:G] = (jnp.dot(xin, wih_f[...], preferred_element_type=jnp.float32)
                              + bias_f[...])
            acc_b = (jnp.dot(xin, wih_b[...], preferred_element_type=jnp.float32)
                     + bias_b[...])
            # Backward gates stored time-reversed so interleaved step s reads ONE
            # aligned (Bp, 8H) tile holding fwd t=s and bwd t=T-1-s.
            for t in range(T):
                gx_ref[(T - 1 - t) * Bp:(T - t) * Bp, G:2 * G] = acc_b[t * Bp:(t + 1) * Bp, :]

            whh_bd = whh_bd_ref[...]                        # (2H, 8H) bf16, read once per layer
            c_f = jnp.zeros((Bp, H), jnp.float32)
            c_b = jnp.zeros((Bp, H), jnp.float32)
            h_cat = None
            for s in range(T):                              # fully unrolled (T=8)
                g = gx_ref[s * Bp:(s + 1) * Bp, :]          # aligned (Bp, 8H) load
                if s > 0:                                   # first step: h == 0, skip matmul
                    g = g + jnp.dot(h_cat, whh_bd, preferred_element_type=jnp.float32)
                act = jnp.tanh(g) * scale8 + off8           # single transcendental pass
                h_f, c_f = lstm_cell(act, c_f, 0)           # fwd chain, time s
                h_b, c_b = lstm_cell(act, c_b, G)           # bwd chain, time T-1-s (independent)
                seq_ref[s * Bp:(s + 1) * Bp, 0:H] = h_f
                seq_ref[(T - 1 - s) * Bp:(T - s) * Bp, H:2 * H] = h_b
                h_cat = jnp.concatenate([h_f, h_b], axis=-1).astype(jnp.bfloat16)

        # ---------------------------- top layer ----------------------------
        l = num_layers - 1
        wih_f, bias_f, wih_b, bias_b, whh_bd_ref = layers[l]
        xin = x_ref[...] if l == 0 else seq_ref[...].astype(jnp.bfloat16)

        # Backward direction: only t = T-1 feeds out[:, -1, :]; h0 = c0 = 0 so the
        # recurrent matmul vanishes and a single gate evaluation suffices.
        x_last = xin[(T - 1) * Bp:T * Bp, :]
        g_b = (jnp.dot(x_last, wih_b[...], preferred_element_type=jnp.float32)
               + bias_b[...])
        act_b = jnp.tanh(g_b) * scale4 + off4
        c_b = act_b[:, 0:H] * act_b[:, 2 * H:3 * H]          # i * g   (f * c0 == 0)
        h_bwd_last = act_b[:, 3 * H:4 * H] * jnp.tanh(c_b)   # o * tanh(c)

        # Forward direction: full recurrence; dead sequence stores eliminated.
        gx_ref[:, 0:G] = (jnp.dot(xin, wih_f[...], preferred_element_type=jnp.float32)
                          + bias_f[...])
        whh_f = whh_bd_ref[0:H, 0:G]                          # fwd block of block-diag weight
        h = jnp.zeros((Bp, H), jnp.float32)
        c = jnp.zeros((Bp, H), jnp.float32)
        for s in range(T):
            g = gx_ref[s * Bp:(s + 1) * Bp, 0:G]
            if s > 0:
                g = g + jnp.dot(h.astype(jnp.bfloat16), whh_f,
                                preferred_element_type=jnp.float32)
            act = jnp.tanh(g) * scale4 + off4
            h, c = lstm_cell(act, c, 0)
        h_fwd_last = h

        # ---- fc on concat(h_fwd[T-1], h_bwd[T-1]) via split weights (no lane concat) ----
        out_ref[...] = (jnp.dot(h_fwd_last.astype(jnp.bfloat16), wfc_f_ref[...],
                                preferred_element_type=jnp.float32)
                        + jnp.dot(h_bwd_last.astype(jnp.bfloat16), wfc_b_ref[...],
                                  preferred_element_type=jnp.float32)
                        + bfc_ref[...])

    return kernel


def prepare_params(layer_params, w_fc, b_fc, hidden_size, c_pad=128):
    """Pre-transpose / scale / pad / cast parameters ONCE (not per forward call).

    layer_params: per layer, a pair (forward, reverse) of PyTorch-layout tuples
      (w_ih (4H, in), w_hh (4H, H), b_ih (4H,), b_hh (4H,)).

    The i/f/o gate columns of W_ih, W_hh and the combined bias are scaled by 0.5
    (in f32, before the bf16 cast) so the kernel can use sigmoid(x)=0.5*tanh(x/2)+0.5
    with a single tanh pass.  The two recurrent weights of a layer are fused into a
    (2H, 8H) block-diagonal matrix so one matmul advances both directions.
    """
    H = hidden_size
    G = 4 * H
    col_scale = jnp.concatenate([
        jnp.full((2 * H,), 0.5, jnp.float32),   # i, f
        jnp.ones((H,), jnp.float32),            # g
        jnp.full((H,), 0.5, jnp.float32),       # o
    ])                                           # (4H,) in PyTorch (i,f,g,o) order

    out = []
    for dirs in layer_params:
        whh_scaled = []
        for (w_ih, w_hh, b_ih, b_hh) in dirs:
            wih_t = jnp.transpose(w_ih).astype(jnp.float32) * col_scale[None, :]
            out.append(wih_t.astype(jnp.bfloat16))                               # (in, 4H)
            out.append(((b_ih + b_hh).astype(jnp.float32) * col_scale)[None, :])  # (1, 4H) f32
            whh_scaled.append(jnp.transpose(w_hh).astype(jnp.float32) * col_scale[None, :])
        whh_bd = jnp.zeros((2 * H, 2 * G), jnp.float32)
        whh_bd = whh_bd.at[:H, :G].set(whh_scaled[0]).at[H:, G:].set(whh_scaled[1])
        out.append(whh_bd.astype(jnp.bfloat16))                                   # (2H, 8H)

    C = w_fc.shape[0]
    wfc_t = jnp.transpose(w_fc).astype(jnp.float32)                               # (2H, C)
    wfc_pad = jnp.zeros((2 * H, c_pad), jnp.float32).at[:, :C].set(wfc_t)
    wfc_pad = wfc_pad.astype(jnp.bfloat16)
    out.append(wfc_pad[:H, :])     # multiplies h_fwd
    out.append(wfc_pad[H:, :])     # multiplies h_bwd
    bfc_pad = jnp.zeros((c_pad,), jnp.float32).at[:C].set(b_fc.astype(jnp.float32))
    out.append(bfc_pad[None, :])                                                  # (1, c_pad)
    return tuple(out)


@functools.partial(jax.jit, static_argnames=("num_layers", "hidden_size", "num_classes"))
def brnn_forward(x, params, *, num_layers, hidden_size, num_classes):
    """x: (B, T, input_size) float32. params: output of prepare_params. Returns (B, C)."""
    B, T, I = x.shape
    H = hidden_size
    G = 4 * H
    Cp = params[-1].shape[-1]                  # lane-padded fc width (128)
    Bp = ((B + 7) // 8) * 8                    # pad batch to a full f32 sublane tile

    # time-major, batch padded to Bp, flattened: layer-0 projection is one batched matmul
    xt = jnp.transpose(x, (1, 0, 2))
    xt = jnp.pad(xt, ((0, 0), (0, Bp - B), (0, 0)))
    x_flat = xt.reshape(T * Bp, I).astype(jnp.bfloat16)

    vmem = pl.BlockSpec(memory_space=pltpu.MemorySpace.VMEM)
    inputs = [x_flat, *params]

    kernel = make_bilstm_kernel(num_layers, T, Bp, I, H, Cp)
    out = pl.pallas_call(
        kernel,
        out_shape=jax.ShapeDtypeStruct((Bp, Cp), jnp.float32),
        in_specs=[vmem] * len(inputs),
        out_specs=vmem,
        scratch_shapes=[
            pltpu.VMEM((T * Bp, 2 * G), jnp.float32),   # gates: [fwd natural | bwd reversed]
            pltpu.VMEM((T * Bp, 2 * H), jnp.float32),   # hidden sequence: [fwd | bwd] lanes
        ],
    )(*inputs)
    return out[:B, :num_classes]


def brnn_reference(x, layer_params, w_fc, b_fc):
    """Pure-JAX f32 reference matching torch nn.LSTM(bidirectional=True) + Linear."""
    B, T, _ = x.shape
    inp = x
    for dirs in layer_params:
        outs_per_dir = []
        for d, (w_ih, w_hh, b_ih, b_hh) in enumerate(dirs):
            H = w_hh.shape[1]
            h = jnp.zeros((B, H), jnp.float32)
            c = jnp.zeros((B, H), jnp.float32)
            t_order = range(T) if d == 0 else range(T - 1, -1, -1)
            hs = [None] * T
            for t in t_order:
                gates = inp[:, t, :] @ w_ih.T + b_ih + h @ w_hh.T + b_hh
                i = jax.nn.sigmoid(gates[:, 0:H])
                f = jax.nn.sigmoid(gates[:, H:2 * H])
                g = jnp.tanh(gates[:, 2 * H:3 * H])
                o = jax.nn.sigmoid(gates[:, 3 * H:4 * H])
                c = f * c + i * g
                h = o * jnp.tanh(c)
                hs[t] = h
            outs_per_dir.append(jnp.stack(hs, axis=1))        # (B, T, H)
        inp = jnp.concatenate(outs_per_dir, axis=-1)           # (B, T, 2H)
    return inp[:, -1, :] @ w_fc.T + b_fc


if __name__ == "__main__":
    # Small shapes consistent with the module's forward.
    B, T, I = 2, 8, 16          # batch, seq_len, input_size
    H, L, C = 32, 2, 5          # hidden_size, num_layers, num_classes

    key = jax.random.PRNGKey(0)

    def uniform(k, shape, bound):
        return jax.random.uniform(k, shape, jnp.float32, -bound, bound)

    k_lstm = 1.0 / (H ** 0.5)
    layer_params = []
    for l in range(L):
        in_sz = I if l == 0 else 2 * H
        dirs = []
        for _d in range(2):     # forward, reverse
            key, k1, k2, k3, k4 = jax.random.split(key, 5)
            dirs.append((
                uniform(k1, (4 * H, in_sz), k_lstm),   # weight_ih
                uniform(k2, (4 * H, H), k_lstm),       # weight_hh
                uniform(k3, (4 * H,), k_lstm),         # bias_ih
                uniform(k4, (4 * H,), k_lstm),         # bias_hh
            ))
        layer_params.append(tuple(dirs))

    key, kw, kb, kx = jax.random.split(key, 4)
    k_fc = 1.0 / ((2 * H) ** 0.5)
    w_fc = uniform(kw, (C, 2 * H), k_fc)
    b_fc = uniform(kb, (C,), k_fc)
    x = jax.random.normal(kx, (B, T, I), jnp.float32)

    params = prepare_params(layer_params, w_fc, b_fc, H)
    out = brnn_forward(x, params, num_layers=L, hidden_size=H, num_classes=C)
    out = jax.block_until_ready(out)

    ref = brnn_reference(x, layer_params, w_fc, b_fc)
    assert out.shape == (B, C)
    # bf16 MXU matmuls -> tolerance loosened vs the f32 reference.
    assert jnp.allclose(out, ref, rtol=3e-2, atol=3e-2), (out, ref)

    print("KERNEL_OK")
</pallas_src>

<mosaic_0001>
module attributes {stable_mosaic.version = 11 : i64} {
  func.func @kernel(%arg0: memref<64x16xbf16, #tpu.memory_space<vmem>>, %arg1: memref<16x128xbf16, #tpu.memory_space<vmem>>, %arg2: memref<1x128xf32, #tpu.memory_space<vmem>>, %arg3: memref<16x128xbf16, #tpu.memory_space<vmem>>, %arg4: memref<1x128xf32, #tpu.memory_space<vmem>>, %arg5: memref<64x256xbf16, #tpu.memory_space<vmem>>, %arg6: memref<64x128xbf16, #tpu.memory_space<vmem>>, %arg7: memref<1x128xf32, #tpu.memory_space<vmem>>, %arg8: memref<64x128xbf16, #tpu.memory_space<vmem>>, %arg9: memref<1x128xf32, #tpu.memory_space<vmem>>, %arg10: memref<64x256xbf16, #tpu.memory_space<vmem>>, %arg11: memref<32x128xbf16, #tpu.memory_space<vmem>>, %arg12: memref<32x128xbf16, #tpu.memory_space<vmem>>, %arg13: memref<1x128xf32, #tpu.memory_space<vmem>>, %arg14: memref<8x128xf32, #tpu.memory_space<vmem>>, %arg15: memref<64x256xf32, #tpu.memory_space<vmem>>, %arg16: memref<64x64xf32, #tpu.memory_space<vmem>>) attributes {dimension_semantics = [], scalar_prefetch = 0 : i64, scratch_operands = 2 : i64, tpu.core_type = #tpu.core_type<tc>} {
    %0 = tpu.iota {dimensions = array<i32: 1>} : vector<8x256xi32>
    %c128_i32 = arith.constant 128 : i32
    %c0_i32 = arith.constant 0 : i32
    %1 = arith.cmpi eq, %c128_i32, %c0_i32 : i32
    %c1_i32 = arith.constant 1 : i32
    %2 = arith.select %1, %c1_i32, %c128_i32 : i32
    %3 = vector.broadcast %2 : i32 to vector<8x256xi32>
    %4 = arith.remsi %0, %3 : vector<8x256xi32>
    %c0_i32_0 = arith.constant 0 : i32
    %5 = vector.broadcast %c0_i32_0 : i32 to vector<8x256xi32>
    %6 = arith.cmpi ne, %4, %5 : vector<8x256xi32>
    %c0_i32_1 = arith.constant 0 : i32
    %7 = vector.broadcast %c0_i32_1 : i32 to vector<8x256xi32>
    %8 = arith.cmpi slt, %4, %7 : vector<8x256xi32>
    %c0_i32_2 = arith.constant 0 : i32
    %9 = arith.cmpi slt, %2, %c0_i32_2 : i32
    %10 = vector.broadcast %9 : i1 to vector<8x256xi1>
    %11 = vector.broadcast %10 : vector<8x256xi1> to vector<8x256xi1>
    %12 = arith.xori %8, %11 : vector<8x256xi1>
    %13 = arith.andi %12, %6 : vector<8x256xi1>
    %14 = vector.broadcast %2 : i32 to vector<8x256xi32>
    %15 = arith.addi %4, %14 : vector<8x256xi32>
    %16 = arith.select %13, %15, %4 : vector<8x256xi1>, vector<8x256xi32>
    %c64_i32 = arith.constant 64 : i32
    %17 = vector.broadcast %c64_i32 : i32 to vector<8x256xi32>
    %18 = arith.cmpi sge, %16, %17 : vector<8x256xi32>
    %c96_i32 = arith.constant 96 : i32
    %19 = vector.broadcast %c96_i32 : i32 to vector<8x256xi32>
    %20 = arith.cmpi slt, %16, %19 : vector<8x256xi32>
    %21 = arith.andi %18, %20 : vector<8x256xi1>
    %cst = arith.constant 1.000000e+00 : f32
    %cst_3 = arith.constant 5.000000e-01 : f32
    %22 = vector.broadcast %cst : f32 to vector<8x256xf32>
    %23 = vector.broadcast %cst_3 : f32 to vector<8x256xf32>
    %24 = arith.select %21, %22, %23 : vector<8x256xi1>, vector<8x256xf32>
    %cst_4 = arith.constant 0.000000e+00 : f32
    %cst_5 = arith.constant 5.000000e-01 : f32
    %25 = vector.broadcast %cst_4 : f32 to vector<8x256xf32>
    %26 = vector.broadcast %cst_5 : f32 to vector<8x256xf32>
    %27 = arith.select %21, %25, %26 : vector<8x256xi1>, vector<8x256xf32>
    %28 = vector.extract_strided_slice %24 {offsets = [0, 0], sizes = [8, 128], strides = [1, 1]} : vector<8x256xf32> to vector<8x128xf32>
    %29 = vector.extract_strided_slice %27 {offsets = [0, 0], sizes = [8, 128], strides = [1, 1]} : vector<8x256xf32> to vector<8x128xf32>
    %c0 = arith.constant 0 : index
    %c0_6 = arith.constant 0 : index
    %30 = vector.load %arg0[%c0, %c0_6] : memref<64x16xbf16, #tpu.memory_space<vmem>>, vector<64x16xbf16>
    %c0_7 = arith.constant 0 : index
    %c0_8 = arith.constant 0 : index
    %31 = vector.load %arg1[%c0_7, %c0_8] : memref<16x128xbf16, #tpu.memory_space<vmem>>, vector<16x128xbf16>
    %cst_9 = arith.constant dense<0.000000e+00> : vector<64x128xf32>
    %32 = tpu.matmul %30, %31, %cst_9 {dimension_numbers = #tpu.dot_dimension_numbers<[1], [0], [0], [1], [0, 0, 1, 1], [], []>} : vector<64x16xbf16>, vector<16x128xbf16>, vector<64x128xf32> -> vector<64x128xf32>
    %c0_10 = arith.constant 0 : index
    %c0_11 = arith.constant 0 : index
    %33 = vector.load %arg2[%c0_10, %c0_11] : memref<1x128xf32, #tpu.memory_space<vmem>>, vector<1x128xf32>
    %34 = vector.broadcast %33 : vector<1x128xf32> to vector<64x128xf32>
    %35 = arith.addf %32, %34 : vector<64x128xf32>
    %c0_12 = arith.constant 0 : index
    %c0_13 = arith.constant 0 : index
    %36 = vector.load %arg15[%c0_12, %c0_13] : memref<64x256xf32, #tpu.memory_space<vmem>>, vector<64x128xf32>
    tpu.vector_store %arg15[%c0_12, %c0_13], %35 {strides = array<i32>} : memref<64x256xf32, #tpu.memory_space<vmem>>, vector<64x128xf32>,
    %c0_14 = arith.constant 0 : index
    %c0_15 = arith.constant 0 : index
    %37 = vector.load %arg3[%c0_14, %c0_15] : memref<16x128xbf16, #tpu.memory_space<vmem>>, vector<16x128xbf16>
    %cst_16 = arith.constant dense<0.000000e+00> : vector<64x128xf32>
    %38 = tpu.matmul %30, %37, %cst_16 {dimension_numbers = #tpu.dot_dimension_numbers<[1], [0], [0], [1], [0, 0, 1, 1], [], []>} : vector<64x16xbf16>, vector<16x128xbf16>, vector<64x128xf32> -> vector<64x128xf32>
    %c0_17 = arith.constant 0 : index
    %c0_18 = arith.constant 0 : index
    %39 = vector.load %arg4[%c0_17, %c0_18] : memref<1x128xf32, #tpu.memory_space<vmem>>, vector<1x128xf32>
    %40 = vector.broadcast %39 : vector<1x128xf32> to vector<64x128xf32>
    %41 = arith.addf %38, %40 : vector<64x128xf32>
    %42 = vector.extract_strided_slice %41 {offsets = [0, 0], sizes = [8, 128], strides = [1, 1]} : vector<64x128xf32> to vector<8x128xf32>
    %c56 = arith.constant 56 : index
    %c128 = arith.constant 128 : index
    %43 = vector.load %arg15[%c56, %c128] : memref<64x256xf32, #tpu.memory_space<vmem>>, vector<8x128xf32>
    tpu.vector_store %arg15[%c56, %c128], %42 {strides = array<i32>} : memref<64x256xf32, #tpu.memory_space<vmem>>, vector<8x128xf32>,
    %44 = vector.extract_strided_slice %41 {offsets = [8, 0], sizes = [8, 128], strides = [1, 1]} : vector<64x128xf32> to vector<8x128xf32>
    %c48 = arith.constant 48 : index
    %c128_19 = arith.constant 128 : index
    %45 = vector.load %arg15[%c48, %c128_19] : memref<64x256xf32, #tpu.memory_space<vmem>>, vector<8x128xf32>
    tpu.vector_store %arg15[%c48, %c128_19], %44 {strides = array<i32>} : memref<64x256xf32, #tpu.memory_space<vmem>>, vector<8x128xf32>,
    %46 = vector.extract_strided_slice %41 {offsets = [16, 0], sizes = [8, 128], strides = [1, 1]} : vector<64x128xf32> to vector<8x128xf32>
    %c40 = arith.constant 40 : index
    %c128_20 = arith.constant 128 : index
    %47 = vector.load %arg15[%c40, %c128_20] : memref<64x256xf32, #tpu.memory_space<vmem>>, vector<8x128xf32>
    tpu.vector_store %arg15[%c40, %c128_20], %46 {strides = array<i32>} : memref<64x256xf32, #tpu.memory_space<vmem>>, vector<8x128xf32>,
    %48 = vector.extract_strided_slice %41 {offsets = [24, 0], sizes = [8, 128], strides = [1, 1]} : vector<64x128xf32> to vector<8x128xf32>
    %c32 = arith.constant 32 : index
    %c128_21 = arith.constant 128 : index
    %49 = vector.load %arg15[%c32, %c128_21] : memref<64x256xf32, #tpu.memory_space<vmem>>, vector<8x128xf32>
    tpu.vector_store %arg15[%c32, %c128_21], %48 {strides = array<i32>} : memref<64x256xf32, #tpu.memory_space<vmem>>, vector<8x128xf32>,
    %50 = vector.extract_strided_slice %41 {offsets = [32, 0], sizes = [8, 128], strides = [1, 1]} : vector<64x128xf32> to vector<8x128xf32>
    %c24 = arith.constant 24 : index
    %c128_22 = arith.constant 128 : index
    %51 = vector.load %arg15[%c24, %c128_22] : memref<64x256xf32, #tpu.memory_space<vmem>>, vector<8x128xf32>
    tpu.vector_store %arg15[%c24, %c128_22], %50 {strides = array<i32>} : memref<64x256xf32, #tpu.memory_space<vmem>>, vector<8x128xf32>,
    %52 = vector.extract_strided_slice %41 {offsets = [40, 0], sizes = [8, 128], strides = [1, 1]} : vector<64x128xf32> to vector<8x128xf32>
    %c16 = arith.constant 16 : index
    %c128_23 = arith.constant 128 : index
    %53 = vector.load %arg15[%c16, %c128_23] : memref<64x256xf32, #tpu.memory_space<vmem>>, vector<8x128xf32>
    tpu.vector_store %arg15[%c16, %c128_23], %52 {strides = array<i32>} : memref<64x256xf32, #tpu.memory_space<vmem>>, vector<8x128xf32>,
    %54 = vector.extract_strided_slice %41 {offsets = [48, 0], sizes = [8, 128], strides = [1, 1]} : vector<64x128xf32> to vector<8x128xf32>
    %c8 = arith.constant 8 : index
    %c128_24 = arith.constant 128 : index
    %55 = vector.load %arg15[%c8, %c128_24] : memref<64x256xf32, #tpu.memory_space<vmem>>, vector<8x128xf32>
    tpu.vector_store %arg15[%c8, %c128_24], %54 {strides = array<i32>} : memref<64x256xf32, #tpu.memory_space<vmem>>, vector<8x128xf32>,
    %56 = vector.extract_strided_slice %41 {offsets = [56, 0], sizes = [8, 128], strides = [1, 1]} : vector<64x128xf32> to vector<8x128xf32>
    %c0_25 = arith.constant 0 : index
    %c128_26 = arith.constant 128 : index
    %57 = vector.load %arg15[%c0_25, %c128_26] : memref<64x256xf32, #tpu.memory_space<vmem>>, vector<8x128xf32>
    tpu.vector_store %arg15[%c0_25, %c128_26], %56 {strides = array<i32>} : memref<64x256xf32, #tpu.memory_space<vmem>>, vector<8x128xf32>,
    %c0_27 = arith.constant 0 : index
    %c0_28 = arith.constant 0 : index
    %58 = vector.load %arg5[%c0_27, %c0_28] : memref<64x256xbf16, #tpu.memory_space<vmem>>, vector<64x256xbf16>
    %cst_29 = arith.constant 0.000000e+00 : f32
    %59 = vector.broadcast %cst_29 : f32 to vector<8x32xf32>
    %cst_30 = arith.constant 0.000000e+00 : f32
    %60 = vector.broadcast %cst_30 : f32 to vector<8x32xf32>
    %c0_31 = arith.constant 0 : index
    %c0_32 = arith.constant 0 : index
    %61 = vector.load %arg15[%c0_31, %c0_32] : memref<64x256xf32, #tpu.memory_space<vmem>>, vector<8x256xf32>
    %62 = math.tanh %61 : vector<8x256xf32>
    %63 = arith.mulf %62, %24 : vector<8x256xf32>
    %64 = arith.addf %63, %27 : vector<8x256xf32>
    %65 = vector.extract_strided_slice %64 {offsets = [0, 0], sizes = [8, 32], strides = [1, 1]} : vector<8x256xf32> to vector<8x32xf32>
    %66 = vector.extract_strided_slice %64 {offsets = [0, 32], sizes = [8, 32], strides = [1, 1]} : vector<8x256xf32> to vector<8x32xf32>
    %67 = vector.extract_strided_slice %64 {offsets = [0, 64], sizes = [8, 32], strides = [1, 1]} : vector<8x256xf32> to vector<8x32xf32>
    %68 = vector.extract_strided_slice %64 {offsets = [0, 96], sizes = [8, 32], strides = [1, 1]} : vector<8x256xf32> to vector<8x32xf32>
    %69 = arith.mulf %66, %59 : vector<8x32xf32>
    %70 = arith.mulf %65, %67 : vector<8x32xf32>
    %71 = arith.addf %69, %70 : vector<8x32xf32>
    %72 = math.tanh %71 : vector<8x32xf32>
    %73 = arith.mulf %68, %72 : vector<8x32xf32>
    %74 = vector.extract_strided_slice %64 {offsets = [0, 128], sizes = [8, 32], strides = [1, 1]} : vector<8x256xf32> to vector<8x32xf32>
    %75 = vector.extract_strided_slice %64 {offsets = [0, 160], sizes = [8, 32], strides = [1, 1]} : vector<8x256xf32> to vector<8x32xf32>
    %76 = vector.extract_strided_slice %64 {offsets = [0, 192], sizes = [8, 32], strides = [1, 1]} : vector<8x256xf32> to vector<8x32xf32>
    %77 = vector.extract_strided_slice %64 {offsets = [0, 224], sizes = [8, 32], strides = [1, 1]} : vector<8x256xf32> to vector<8x32xf32>
    %78 = arith.mulf %75, %60 : vector<8x32xf32>
    %79 = arith.mulf %74, %76 : vector<8x32xf32>
    %80 = arith.addf %78, %79 : vector<8x32xf32>
    %81 = math.tanh %80 : vector<8x32xf32>
    %82 = arith.mulf %77, %81 : vector<8x32xf32>
    %c0_33 = arith.constant 0 : index
    %c0_34 = arith.constant 0 : index
    %83 = vector.load %arg16[%c0_33, %c0_34] : memref<64x64xf32, #tpu.memory_space<vmem>>, vector<8x32xf32>
    tpu.vector_store %arg16[%c0_33, %c0_34], %73 {strides = array<i32>} : memref<64x64xf32, #tpu.memory_space<vmem>>, vector<8x32xf32>,
    %c56_35 = arith.constant 56 : index
    %c32_36 = arith.constant 32 : index
    %84 = vector.load %arg16[%c56_35, %c32_36] : memref<64x64xf32, #tpu.memory_space<vmem>>, vector<8x32xf32>
    tpu.vector_store %arg16[%c56_35, %c32_36], %82 {strides = array<i32>} : memref<64x64xf32, #tpu.memory_space<vmem>>, vector<8x32xf32>,
    %85 = tpu.concatenate %73, %82 in 1 : vector<8x32xf32>, vector<8x32xf32> -> vector<8x64xf32>
    %86 = arith.truncf %85 : vector<8x64xf32> to vector<8x64xbf16>
    %c8_37 = arith.constant 8 : index
    %c0_38 = arith.constant 0 : index
    %87 = vector.load %arg15[%c8_37, %c0_38] : memref<64x256xf32, #tpu.memory_space<vmem>>, vector<8x256xf32>
    %cst_39 = arith.constant dense<0.000000e+00> : vector<8x256xf32>
    %88 = tpu.matmul %86, %58, %cst_39 {dimension_numbers = #tpu.dot_dimension_numbers<[1], [0], [0], [1], [0, 0, 1, 1], [], []>} : vector<8x64xbf16>, vector<64x256xbf16>, vector<8x256xf32> -> vector<8x256xf32>
    %89 = arith.addf %87, %88 : vector<8x256xf32>
    %90 = math.tanh %89 : vector<8x256xf32>
    %91 = arith.mulf %90, %24 : vector<8x256xf32>
    %92 = arith.addf %91, %27 : vector<8x256xf32>
    %93 = vector.extract_strided_slice %92 {offsets = [0, 0], sizes = [8, 32], strides = [1, 1]} : vector<8x256xf32> to vector<8x32xf32>
    %94 = vector.extract_strided_slice %92 {offsets = [0, 32], sizes = [8, 32], strides = [1, 1]} : vector<8x256xf32> to vector<8x32xf32>
    %95 = vector.extract_strided_slice %92 {offsets = [0, 64], sizes = [8, 32], strides = [1, 1]} : vector<8x256xf32> to vector<8x32xf32>
    %96 = vector.extract_strided_slice %92 {offsets = [0, 96], sizes = [8, 32], strides = [1, 1]} : vector<8x256xf32> to vector<8x32xf32>
    %97 = arith.mulf %94, %71 : vector<8x32xf32>
    %98 = arith.mulf %93, %95 : vector<8x32xf32>
    %99 = arith.addf %97, %98 : vector<8x32xf32>
    %100 = math.tanh %99 : vector<8x32xf32>
    %101 = arith.mulf %96, %100 : vector<8x32xf32>
    %102 = vector.extract_strided_slice %92 {offsets = [0, 128], sizes = [8, 32], strides = [1, 1]} : vector<8x256xf32> to vector<8x32xf32>
    %103 = vector.extract_strided_slice %92 {offsets = [0, 160], sizes = [8, 32], strides = [1, 1]} : vector<8x256xf32> to vector<8x32xf32>
    %104 = vector.extract_strided_slice %92 {offsets = [0, 192], sizes = [8, 32], strides = [1, 1]} : vector<8x256xf32> to vector<8x32xf32>
    %105 = vector.extract_strided_slice %92 {offsets = [0, 224], sizes = [8, 32], strides = [1, 1]} : vector<8x256xf32> to vector<8x32xf32>
    %106 = arith.mulf %103, %80 : vector<8x32xf32>
    %107 = arith.mulf %102, %104 : vector<8x32xf32>
    %108 = arith.addf %106, %107 : vector<8x32xf32>
    %109 = math.tanh %108 : vector<8x32xf32>
    %110 = arith.mulf %105, %109 : vector<8x32xf32>
    %c8_40 = arith.constant 8 : index
    %c0_41 = arith.constant 0 : index
    %111 = vector.load %arg16[%c8_40, %c0_41] : memref<64x64xf32, #tpu.memory_space<vmem>>, vector<8x32xf32>
    tpu.vector_store %arg16[%c8_40, %c0_41], %101 {strides = array<i32>} : memref<64x64xf32, #tpu.memory_space<vmem>>, vector<8x32xf32>,
    %c48_42 = arith.constant 48 : index
    %c32_43 = arith.constant 32 : index
    %112 = vector.load %arg16[%c48_42, %c32_43] : memref<64x64xf32, #tpu.memory_space<vmem>>, vector<8x32xf32>
    tpu.vector_store %arg16[%c48_42, %c32_43], %110 {strides = array<i32>} : memref<64x64xf32, #tpu.memory_space<vmem>>, vector<8x32xf32>,
    %113 = tpu.concatenate %101, %110 in 1 : vector<8x32xf32>, vector<8x32xf32> -> vector<8x64xf32>
    %114 = arith.truncf %113 : vector<8x64xf32> to vector<8x64xbf16>
    %c16_44 = arith.constant 16 : index
    %c0_45 = arith.constant 0 : index
    %115 = vector.load %arg15[%c16_44, %c0_45] : memref<64x256xf32, #tpu.memory_space<vmem>>, vector<8x256xf32>
    %cst_46 = arith.constant dense<0.000000e+00> : vector<8x256xf32>
    %116 = tpu.matmul %114, %58, %cst_46 {dimension_numbers = #tpu.dot_dimension_numbers<[1], [0], [0], [1], [0, 0, 1, 1], [], []>} : vector<8x64xbf16>, vector<64x256xbf16>, vector<8x256xf32> -> vector<8x256xf32>
    %117 = arith.addf %115, %116 : vector<8x256xf32>
    %118 = math.tanh %117 : vector<8x256xf32>
    %119 = arith.mulf %118, %24 : vector<8x256xf32>
    %120 = arith.addf %119, %27 : vector<8x256xf32>
    %121 = vector.extract_strided_slice %120 {offsets = [0, 0], sizes = [8, 32], strides = [1, 1]} : vector<8x256xf32> to vector<8x32xf32>
    %122 = vector.extract_strided_slice %120 {offsets = [0, 32], sizes = [8, 32], strides = [1, 1]} : vector<8x256xf32> to vector<8x32xf32>
    %123 = vector.extract_strided_slice %120 {offsets = [0, 64], sizes = [8, 32], strides = [1, 1]} : vector<8x256xf32> to vector<8x32xf32>
    %124 = vector.extract_strided_slice %120 {offsets = [0, 96], sizes = [8, 32], strides = [1, 1]} : vector<8x256xf32> to vector<8x32xf32>
    %125 = arith.mulf %122, %99 : vector<8x32xf32>
    %126 = arith.mulf %121, %123 : vector<8x32xf32>
    %127 = arith.addf %125, %126 : vector<8x32xf32>
    %128 = math.tanh %127 : vector<8x32xf32>
    %129 = arith.mulf %124, %128 : vector<8x32xf32>
    %130 = vector.extract_strided_slice %120 {offsets = [0, 128], sizes = [8, 32], strides = [1, 1]} : vector<8x256xf32> to vector<8x32xf32>
    %131 = vector.extract_strided_slice %120 {offsets = [0, 160], sizes = [8, 32], strides = [1, 1]} : vector<8x256xf32> to vector<8x32xf32>
    %132 = vector.extract_strided_slice %120 {offsets = [0, 192], sizes = [8, 32], strides = [1, 1]} : vector<8x256xf32> to vector<8x32xf32>
    %133 = vector.extract_strided_slice %120 {offsets = [0, 224], sizes = [8, 32], strides = [1, 1]} : vector<8x256xf32> to vector<8x32xf32>
    %134 = arith.mulf %131, %108 : vector<8x32xf32>
    %135 = arith.mulf %130, %132 : vector<8x32xf32>
    %136 = arith.addf %134, %135 : vector<8x32xf32>
    %137 = math.tanh %136 : vector<8x32xf32>
    %138 = arith.mulf %133, %137 : vector<8x32xf32>
    %c16_47 = arith.constant 16 : index
    %c0_48 = arith.constant 0 : index
    %139 = vector.load %arg16[%c16_47, %c0_48] : memref<64x64xf32, #tpu.memory_space<vmem>>, vector<8x32xf32>
    tpu.vector_store %arg16[%c16_47, %c0_48], %129 {strides = array<i32>} : memref<64x64xf32, #tpu.memory_space<vmem>>, vector<8x32xf32>,
    %c40_49 = arith.constant 40 : index
    %c32_50 = arith.constant 32 : index
    %140 = vector.load %arg16[%c40_49, %c32_50] : memref<64x64xf32, #tpu.memory_space<vmem>>, vector<8x32xf32>
    tpu.vector_store %arg16[%c40_49, %c32_50], %138 {strides = array<i32>} : memref<64x64xf32, #tpu.memory_space<vmem>>, vector<8x32xf32>,
    %141 = tpu.concatenate %129, %138 in 1 : vector<8x32xf32>, vector<8x32xf32> -> vector<8x64xf32>
    %142 = arith.truncf %141 : vector<8x64xf32> to vector<8x64xbf16>
    %c24_51 = arith.constant 24 : index
    %c0_52 = arith.constant 0 : index
    %143 = vector.load %arg15[%c24_51, %c0_52] : memref<64x256xf32, #tpu.memory_space<vmem>>, vector<8x256xf32>
    %cst_53 = arith.constant dense<0.000000e+00> : vector<8x256xf32>
    %144 = tpu.matmul %142, %58, %cst_53 {dimension_numbers = #tpu.dot_dimension_numbers<[1], [0], [0], [1], [0, 0, 1, 1], [], []>} : vector<8x64xbf16>, vector<64x256xbf16>, vector<8x256xf32> -> vector<8x256xf32>
    %145 = arith.addf %143, %144 : vector<8x256xf32>
    %146 = math.tanh %145 : vector<8x256xf32>
    %147 = arith.mulf %146, %24 : vector<8x256xf32>
    %148 = arith.addf %147, %27 : vector<8x256xf32>
    %149 = vector.extract_strided_slice %148 {offsets = [0, 0], sizes = [8, 32], strides = [1, 1]} : vector<8x256xf32> to vector<8x32xf32>
    %150 = vector.extract_strided_slice %148 {offsets = [0, 32], sizes = [8, 32], strides = [1, 1]} : vector<8x256xf32> to vector<8x32xf32>
    %151 = vector.extract_strided_slice %148 {offsets = [0, 64], sizes = [8, 32], strides = [1, 1]} : vector<8x256xf32> to vector<8x32xf32>
    %152 = vector.extract_strided_slice %148 {offsets = [0, 96], sizes = [8, 32], strides = [1, 1]} : vector<8x256xf32> to vector<8x32xf32>
    %153 = arith.mulf %150, %127 : vector<8x32xf32>
    %154 = arith.mulf %149, %151 : vector<8x32xf32>
    %155 = arith.addf %153, %154 : vector<8x32xf32>
    %156 = math.tanh %155 : vector<8x32xf32>
    %157 = arith.mulf %152, %156 : vector<8x32xf32>
    %158 = vector.extract_strided_slice %148 {offsets = [0, 128], sizes = [8, 32], strides = [1, 1]} : vector<8x256xf32> to vector<8x32xf32>
    %159 = vector.extract_strided_slice %148 {offsets = [0, 160], sizes = [8, 32], strides = [1, 1]} : vector<8x256xf32> to vector<8x32xf32>
    %160 = vector.extract_strided_slice %148 {offsets = [0, 192], sizes = [8, 32], strides = [1, 1]} : vector<8x256xf32> to vector<8x32xf32>
    %161 = vector.extract_strided_slice %148 {offsets = [0, 224], sizes = [8, 32], strides = [1, 1]} : vector<8x256xf32> to vector<8x32xf32>
    %162 = arith.mulf %159, %136 : vector<8x32xf32>
    %163 = arith.mulf %158, %160 : vector<8x32xf32>
    %164 = arith.addf %162, %163 : vector<8x32xf32>
    %165 = math.tanh %164 : vector<8x32xf32>
    %166 = arith.mulf %161, %165 : vector<8x32xf32>
    %c24_54 = arith.constant 24 : index
    %c0_55 = arith.constant 0 : index
    %167 = vector.load %arg16[%c24_54, %c0_55] : memref<64x64xf32, #tpu.memory_space<vmem>>, vector<8x32xf32>
    tpu.vector_store %arg16[%c24_54, %c0_55], %157 {strides = array<i32>} : memref<64x64xf32, #tpu.memory_space<vmem>>, vector<8x32xf32>,
    %c32_56 = arith.constant 32 : index
    %c32_57 = arith.constant 32 : index
    %168 = vector.load %arg16[%c32_56, %c32_57] : memref<64x64xf32, #tpu.memory_space<vmem>>, vector<8x32xf32>
    tpu.vector_store %arg16[%c32_56, %c32_57], %166 {strides = array<i32>} : memref<64x64xf32, #tpu.memory_space<vmem>>, vector<8x32xf32>,
    %169 = tpu.concatenate %157, %166 in 1 : vector<8x32xf32>, vector<8x32xf32> -> vector<8x64xf32>
    %170 = arith.truncf %169 : vector<8x64xf32> to vector<8x64xbf16>
    %c32_58 = arith.constant 32 : index
    %c0_59 = arith.constant 0 : index
    %171 = vector.load %arg15[%c32_58, %c0_59] : memref<64x256xf32, #tpu.memory_space<vmem>>, vector<8x256xf32>
    %cst_60 = arith.constant dense<0.000000e+00> : vector<8x256xf32>
    %172 = tpu.matmul %170, %58, %cst_60 {dimension_numbers = #tpu.dot_dimension_numbers<[1], [0], [0], [1], [0, 0, 1, 1], [], []>} : vector<8x64xbf16>, vector<64x256xbf16>, vector<8x256xf32> -> vector<8x256xf32>
    %173 = arith.addf %171, %172 : vector<8x256xf32>
    %174 = math.tanh %173 : vector<8x256xf32>
    %175 = arith.mulf %174, %24 : vector<8x256xf32>
    %176 = arith.addf %175, %27 : vector<8x256xf32>
    %177 = vector.extract_strided_slice %176 {offsets = [0, 0], sizes = [8, 32], strides = [1, 1]} : vector<8x256xf32> to vector<8x32xf32>
    %178 = vector.extract_strided_slice %176 {offsets = [0, 32], sizes = [8, 32], strides = [1, 1]} : vector<8x256xf32> to vector<8x32xf32>
    %179 = vector.extract_strided_slice %176 {offsets = [0, 64], sizes = [8, 32], strides = [1, 1]} : vector<8x256xf32> to vector<8x32xf32>
    %180 = vector.extract_strided_slice %176 {offsets = [0, 96], sizes = [8, 32], strides = [1, 1]} : vector<8x256xf32> to vector<8x32xf32>
    %181 = arith.mulf %178, %155 : vector<8x32xf32>
    %182 = arith.mulf %177, %179 : vector<8x32xf32>
    %183 = arith.addf %181, %182 : vector<8x32xf32>
    %184 = math.tanh %183 : vector<8x32xf32>
    %185 = arith.mulf %180, %184 : vector<8x32xf32>
    %186 = vector.extract_strided_slice %176 {offsets = [0, 128], sizes = [8, 32], strides = [1, 1]} : vector<8x256xf32> to vector<8x32xf32>
    %187 = vector.extract_strided_slice %176 {offsets = [0, 160], sizes = [8, 32], strides = [1, 1]} : vector<8x256xf32> to vector<8x32xf32>
    %188 = vector.extract_strided_slice %176 {offsets = [0, 192], sizes = [8, 32], strides = [1, 1]} : vector<8x256xf32> to vector<8x32xf32>
    %189 = vector.extract_strided_slice %176 {offsets = [0, 224], sizes = [8, 32], strides = [1, 1]} : vector<8x256xf32> to vector<8x32xf32>
    %190 = arith.mulf %187, %164 : vector<8x32xf32>
    %191 = arith.mulf %186, %188 : vector<8x32xf32>
    %192 = arith.addf %190, %191 : vector<8x32xf32>
    %193 = math.tanh %192 : vector<8x32xf32>
    %194 = arith.mulf %189, %193 : vector<8x32xf32>
    %c32_61 = arith.constant 32 : index
    %c0_62 = arith.constant 0 : index
    %195 = vector.load %arg16[%c32_61, %c0_62] : memref<64x64xf32, #tpu.memory_space<vmem>>, vector<8x32xf32>
    tpu.vector_store %arg16[%c32_61, %c0_62], %185 {strides = array<i32>} : memref<64x64xf32, #tpu.memory_space<vmem>>, vector<8x32xf32>,
    %c24_63 = arith.constant 24 : index
    %c32_64 = arith.constant 32 : index
    %196 = vector.load %arg16[%c24_63, %c32_64] : memref<64x64xf32, #tpu.memory_space<vmem>>, vector<8x32xf32>
    tpu.vector_store %arg16[%c24_63, %c32_64], %194 {strides = array<i32>} : memref<64x64xf32, #tpu.memory_space<vmem>>, vector<8x32xf32>,
    %197 = tpu.concatenate %185, %194 in 1 : vector<8x32xf32>, vector<8x32xf32> -> vector<8x64xf32>
    %198 = arith.truncf %197 : vector<8x64xf32> to vector<8x64xbf16>
    %c40_65 = arith.constant 40 : index
    %c0_66 = arith.constant 0 : index
    %199 = vector.load %arg15[%c40_65, %c0_66] : memref<64x256xf32, #tpu.memory_space<vmem>>, vector<8x256xf32>
    %cst_67 = arith.constant dense<0.000000e+00> : vector<8x256xf32>
    %200 = tpu.matmul %198, %58, %cst_67 {dimension_numbers = #tpu.dot_dimension_numbers<[1], [0], [0], [1], [0, 0, 1, 1], [], []>} : vector<8x64xbf16>, vector<64x256xbf16>, vector<8x256xf32> -> vector<8x256xf32>
    %201 = arith.addf %199, %200 : vector<8x256xf32>
    %202 = math.tanh %201 : vector<8x256xf32>
    %203 = arith.mulf %202, %24 : vector<8x256xf32>
    %204 = arith.addf %203, %27 : vector<8x256xf32>
    %205 = vector.extract_strided_slice %204 {offsets = [0, 0], sizes = [8, 32], strides = [1, 1]} : vector<8x256xf32> to vector<8x32xf32>
    %206 = vector.extract_strided_slice %204 {offsets = [0, 32], sizes = [8, 32], strides = [1, 1]} : vector<8x256xf32> to vector<8x32xf32>
    %207 = vector.extract_strided_slice %204 {offsets = [0, 64], sizes = [8, 32], strides = [1, 1]} : vector<8x256xf32> to vector<8x32xf32>
    %208 = vector.extract_strided_slice %204 {offsets = [0, 96], sizes = [8, 32], strides = [1, 1]} : vector<8x256xf32> to vector<8x32xf32>
    %209 = arith.mulf %206, %183 : vector<8x32xf32>
    %210 = arith.mulf %205, %207 : vector<8x32xf32>
    %211 = arith.addf %209, %210 : vector<8x32xf32>
    %212 = math.tanh %211 : vector<8x32xf32>
    %213 = arith.mulf %208, %212 : vector<8x32xf32>
    %214 = vector.extract_strided_slice %204 {offsets = [0, 128], sizes = [8, 32], strides = [1, 1]} : vector<8x256xf32> to vector<8x32xf32>
    %215 = vector.extract_strided_slice %204 {offsets = [0, 160], sizes = [8, 32], strides = [1, 1]} : vector<8x256xf32> to vector<8x32xf32>
    %216 = vector.extract_strided_slice %204 {offsets = [0, 192], sizes = [8, 32], strides = [1, 1]} : vector<8x256xf32> to vector<8x32xf32>
    %217 = vector.extract_strided_slice %204 {offsets = [0, 224], sizes = [8, 32], strides = [1, 1]} : vector<8x256xf32> to vector<8x32xf32>
    %218 = arith.mulf %215, %192 : vector<8x32xf32>
    %219 = arith.mulf %214, %216 : vector<8x32xf32>
    %220 = arith.addf %218, %219 : vector<8x32xf32>
    %221 = math.tanh %220 : vector<8x32xf32>
    %222 = arith.mulf %217, %221 : vector<8x32xf32>
    %c40_68 = arith.constant 40 : index
    %c0_69 = arith.constant 0 : index
    %223 = vector.load %arg16[%c40_68, %c0_69] : memref<64x64xf32, #tpu.memory_space<vmem>>, vector<8x32xf32>
    tpu.vector_store %arg16[%c40_68, %c0_69], %213 {strides = array<i32>} : memref<64x64xf32, #tpu.memory_space<vmem>>, vector<8x32xf32>,
    %c16_70 = arith.constant 16 : index
    %c32_71 = arith.constant 32 : index
    %224 = vector.load %arg16[%c16_70, %c32_71] : memref<64x64xf32, #tpu.memory_space<vmem>>, vector<8x32xf32>
    tpu.vector_store %arg16[%c16_70, %c32_71], %222 {strides = array<i32>} : memref<64x64xf32, #tpu.memory_space<vmem>>, vector<8x32xf32>,
    %225 = tpu.concatenate %213, %222 in 1 : vector<8x32xf32>, vector<8x32xf32> -> vector<8x64xf32>
    %226 = arith.truncf %225 : vector<8x64xf32> to vector<8x64xbf16>
    %c48_72 = arith.constant 48 : index
    %c0_73 = arith.constant 0 : index
    %227 = vector.load %arg15[%c48_72, %c0_73] : memref<64x256xf32, #tpu.memory_space<vmem>>, vector<8x256xf32>
    %cst_74 = arith.constant dense<0.000000e+00> : vector<8x256xf32>
    %228 = tpu.matmul %226, %58, %cst_74 {dimension_numbers = #tpu.dot_dimension_numbers<[1], [0], [0], [1], [0, 0, 1, 1], [], []>} : vector<8x64xbf16>, vector<64x256xbf16>, vector<8x256xf32> -> vector<8x256xf32>
    %229 = arith.addf %227, %228 : vector<8x256xf32>
    %230 = math.tanh %229 : vector<8x256xf32>
    %231 = arith.mulf %230, %24 : vector<8x256xf32>
    %232 = arith.addf %231, %27 : vector<8x256xf32>
    %233 = vector.extract_strided_slice %232 {offsets = [0, 0], sizes = [8, 32], strides = [1, 1]} : vector<8x256xf32> to vector<8x32xf32>
    %234 = vector.extract_strided_slice %232 {offsets = [0, 32], sizes = [8, 32], strides = [1, 1]} : vector<8x256xf32> to vector<8x32xf32>
    %235 = vector.extract_strided_slice %232 {offsets = [0, 64], sizes = [8, 32], strides = [1, 1]} : vector<8x256xf32> to vector<8x32xf32>
    %236 = vector.extract_strided_slice %232 {offsets = [0, 96], sizes = [8, 32], strides = [1, 1]} : vector<8x256xf32> to vector<8x32xf32>
    %237 = arith.mulf %234, %211 : vector<8x32xf32>
    %238 = arith.mulf %233, %235 : vector<8x32xf32>
    %239 = arith.addf %237, %238 : vector<8x32xf32>
    %240 = math.tanh %239 : vector<8x32xf32>
    %241 = arith.mulf %236, %240 : vector<8x32xf32>
    %242 = vector.extract_strided_slice %232 {offsets = [0, 128], sizes = [8, 32], strides = [1, 1]} : vector<8x256xf32> to vector<8x32xf32>
    %243 = vector.extract_strided_slice %232 {offsets = [0, 160], sizes = [8, 32], strides = [1, 1]} : vector<8x256xf32> to vector<8x32xf32>
    %244 = vector.extract_strided_slice %232 {offsets = [0, 192], sizes = [8, 32], strides = [1, 1]} : vector<8x256xf32> to vector<8x32xf32>
    %245 = vector.extract_strided_slice %232 {offsets = [0, 224], sizes = [8, 32], strides = [1, 1]} : vector<8x256xf32> to vector<8x32xf32>
    %246 = arith.mulf %243, %220 : vector<8x32xf32>
    %247 = arith.mulf %242, %244 : vector<8x32xf32>
    %248 = arith.addf %246, %247 : vector<8x32xf32>
    %249 = math.tanh %248 : vector<8x32xf32>
    %250 = arith.mulf %245, %249 : vector<8x32xf32>
    %c48_75 = arith.constant 48 : index
    %c0_76 = arith.constant 0 : index
    %251 = vector.load %arg16[%c48_75, %c0_76] : memref<64x64xf32, #tpu.memory_space<vmem>>, vector<8x32xf32>
    tpu.vector_store %arg16[%c48_75, %c0_76], %241 {strides = array<i32>} : memref<64x64xf32, #tpu.memory_space<vmem>>, vector<8x32xf32>,
    %c8_77 = arith.constant 8 : index
    %c32_78 = arith.constant 32 : index
    %252 = vector.load %arg16[%c8_77, %c32_78] : memref<64x64xf32, #tpu.memory_space<vmem>>, vector<8x32xf32>
    tpu.vector_store %arg16[%c8_77, %c32_78], %250 {strides = array<i32>} : memref<64x64xf32, #tpu.memory_space<vmem>>, vector<8x32xf32>,
    %253 = tpu.concatenate %241, %250 in 1 : vector<8x32xf32>, vector<8x32xf32> -> vector<8x64xf32>
    %254 = arith.truncf %253 : vector<8x64xf32> to vector<8x64xbf16>
    %c56_79 = arith.constant 56 : index
    %c0_80 = arith.constant 0 : index
    %255 = vector.load %arg15[%c56_79, %c0_80] : memref<64x256xf32, #tpu.memory_space<vmem>>, vector<8x256xf32>
    %cst_81 = arith.constant dense<0.000000e+00> : vector<8x256xf32>
    %256 = tpu.matmul %254, %58, %cst_81 {dimension_numbers = #tpu.dot_dimension_numbers<[1], [0], [0], [1], [0, 0, 1, 1], [], []>} : vector<8x64xbf16>, vector<64x256xbf16>, vector<8x256xf32> -> vector<8x256xf32>
    %257 = arith.addf %255, %256 : vector<8x256xf32>
    %258 = math.tanh %257 : vector<8x256xf32>
    %259 = arith.mulf %258, %24 : vector<8x256xf32>
    %260 = arith.addf %259, %27 : vector<8x256xf32>
    %261 = vector.extract_strided_slice %260 {offsets = [0, 0], sizes = [8, 32], strides = [1, 1]} : vector<8x256xf32> to vector<8x32xf32>
    %262 = vector.extract_strided_slice %260 {offsets = [0, 32], sizes = [8, 32], strides = [1, 1]} : vector<8x256xf32> to vector<8x32xf32>
    %263 = vector.extract_strided_slice %260 {offsets = [0, 64], sizes = [8, 32], strides = [1, 1]} : vector<8x256xf32> to vector<8x32xf32>
    %264 = vector.extract_strided_slice %260 {offsets = [0, 96], sizes = [8, 32], strides = [1, 1]} : vector<8x256xf32> to vector<8x32xf32>
    %265 = arith.mulf %262, %239 : vector<8x32xf32>
    %266 = arith.mulf %261, %263 : vector<8x32xf32>
    %267 = arith.addf %265, %266 : vector<8x32xf32>
    %268 = math.tanh %267 : vector<8x32xf32>
    %269 = arith.mulf %264, %268 : vector<8x32xf32>
    %270 = vector.extract_strided_slice %260 {offsets = [0, 128], sizes = [8, 32], strides = [1, 1]} : vector<8x256xf32> to vector<8x32xf32>
    %271 = vector.extract_strided_slice %260 {offsets = [0, 160], sizes = [8, 32], strides = [1, 1]} : vector<8x256xf32> to vector<8x32xf32>
    %272 = vector.extract_strided_slice %260 {offsets = [0, 192], sizes = [8, 32], strides = [1, 1]} : vector<8x256xf32> to vector<8x32xf32>
    %273 = vector.extract_strided_slice %260 {offsets = [0, 224], sizes = [8, 32], strides = [1, 1]} : vector<8x256xf32> to vector<8x32xf32>
    %274 = arith.mulf %271, %248 : vector<8x32xf32>
    %275 = arith.mulf %270, %272 : vector<8x32xf32>
    %276 = arith.addf %274, %275 : vector<8x32xf32>
    %277 = math.tanh %276 : vector<8x32xf32>
    %278 = arith.mulf %273, %277 : vector<8x32xf32>
    %c56_82 = arith.constant 56 : index
    %c0_83 = arith.constant 0 : index
    %279 = vector.load %arg16[%c56_82, %c0_83] : memref<64x64xf32, #tpu.memory_space<vmem>>, vector<8x32xf32>
    tpu.vector_store %arg16[%c56_82, %c0_83], %269 {strides = array<i32>} : memref<64x64xf32, #tpu.memory_space<vmem>>, vector<8x32xf32>,
    %c0_84 = arith.constant 0 : index
    %c32_85 = arith.constant 32 : index
    %280 = vector.load %arg16[%c0_84, %c32_85] : memref<64x64xf32, #tpu.memory_space<vmem>>, vector<8x32xf32>
    tpu.vector_store %arg16[%c0_84, %c32_85], %278 {strides = array<i32>} : memref<64x64xf32, #tpu.memory_space<vmem>>, vector<8x32xf32>,
    %c0_86 = arith.constant 0 : index
    %c0_87 = arith.constant 0 : index
    %281 = vector.load %arg16[%c0_86, %c0_87] : memref<64x64xf32, #tpu.memory_space<vmem>>, vector<64x64xf32>
    %282 = arith.truncf %281 : vector<64x64xf32> to vector<64x64xbf16>
    %283 = vector.extract_strided_slice %282 {offsets = [56, 0], sizes = [8, 64], strides = [1, 1]} : vector<64x64xbf16> to vector<8x64xbf16>
    %c0_88 = arith.constant 0 : index
    %c0_89 = arith.constant 0 : index
    %284 = vector.load %arg8[%c0_88, %c0_89] : memref<64x128xbf16, #tpu.memory_space<vmem>>, vector<64x128xbf16>
    %cst_90 = arith.constant dense<0.000000e+00> : vector<8x128xf32>
    %285 = tpu.matmul %283, %284, %cst_90 {dimension_numbers = #tpu.dot_dimension_numbers<[1], [0], [0], [1], [0, 0, 1, 1], [], []>} : vector<8x64xbf16>, vector<64x128xbf16>, vector<8x128xf32> -> vector<8x128xf32>
    %c0_91 = arith.constant 0 : index
    %c0_92 = arith.constant 0 : index
    %286 = vector.load %arg9[%c0_91, %c0_92] : memref<1x128xf32, #tpu.memory_space<vmem>>, vector<1x128xf32>
    %287 = vector.broadcast %286 : vector<1x128xf32> to vector<8x128xf32>
    %288 = arith.addf %285, %287 : vector<8x128xf32>
    %289 = math.tanh %288 : vector<8x128xf32>
    %290 = arith.mulf %289, %28 : vector<8x128xf32>
    %291 = arith.addf %290, %29 : vector<8x128xf32>
    %292 = vector.extract_strided_slice %291 {offsets = [0, 0], sizes = [8, 32], strides = [1, 1]} : vector<8x128xf32> to vector<8x32xf32>
    %293 = vector.extract_strided_slice %291 {offsets = [0, 64], sizes = [8, 32], strides = [1, 1]} : vector<8x128xf32> to vector<8x32xf32>
    %294 = arith.mulf %292, %293 : vector<8x32xf32>
    %295 = vector.extract_strided_slice %291 {offsets = [0, 96], sizes = [8, 32], strides = [1, 1]} : vector<8x128xf32> to vector<8x32xf32>
    %296 = math.tanh %294 : vector<8x32xf32>
    %297 = arith.mulf %295, %296 : vector<8x32xf32>
    %c0_93 = arith.constant 0 : index
    %c0_94 = arith.constant 0 : index
    %298 = vector.load %arg6[%c0_93, %c0_94] : memref<64x128xbf16, #tpu.memory_space<vmem>>, vector<64x128xbf16>
    %cst_95 = arith.constant dense<0.000000e+00> : vector<64x128xf32>
    %299 = tpu.matmul %282, %298, %cst_95 {dimension_numbers = #tpu.dot_dimension_numbers<[1], [0], [0], [1], [0, 0, 1, 1], [], []>} : vector<64x64xbf16>, vector<64x128xbf16>, vector<64x128xf32> -> vector<64x128xf32>
    %c0_96 = arith.constant 0 : index
    %c0_97 = arith.constant 0 : index
    %300 = vector.load %arg7[%c0_96, %c0_97] : memref<1x128xf32, #tpu.memory_space<vmem>>, vector<1x128xf32>
    %301 = vector.broadcast %300 : vector<1x128xf32> to vector<64x128xf32>
    %302 = arith.addf %299, %301 : vector<64x128xf32>
    %c0_98 = arith.constant 0 : index
    %c0_99 = arith.constant 0 : index
    %303 = vector.load %arg15[%c0_98, %c0_99] : memref<64x256xf32, #tpu.memory_space<vmem>>, vector<64x128xf32>
    tpu.vector_store %arg15[%c0_98, %c0_99], %302 {strides = array<i32>} : memref<64x256xf32, #tpu.memory_space<vmem>>, vector<64x128xf32>,
    %c0_100 = arith.constant 0 : index
    %c0_101 = arith.constant 0 : index
    %304 = vector.load %arg10[%c0_100, %c0_101] : memref<64x256xbf16, #tpu.memory_space<vmem>>, vector<32x128xbf16>
    %cst_102 = arith.constant 0.000000e+00 : f32
    %305 = vector.broadcast %cst_102 : f32 to vector<8x32xf32>
    %c0_103 = arith.constant 0 : index
    %c0_104 = arith.constant 0 : index
    %306 = vector.load %arg15[%c0_103, %c0_104] : memref<64x256xf32, #tpu.memory_space<vmem>>, vector<8x128xf32>
    %307 = math.tanh %306 : vector<8x128xf32>
    %308 = arith.mulf %307, %28 : vector<8x128xf32>
    %309 = arith.addf %308, %29 : vector<8x128xf32>
    %310 = vector.extract_strided_slice %309 {offsets = [0, 0], sizes = [8, 32], strides = [1, 1]} : vector<8x128xf32> to vector<8x32xf32>
    %311 = vector.extract_strided_slice %309 {offsets = [0, 32], sizes = [8, 32], strides = [1, 1]} : vector<8x128xf32> to vector<8x32xf32>
    %312 = vector.extract_strided_slice %309 {offsets = [0, 64], sizes = [8, 32], strides = [1, 1]} : vector<8x128xf32> to vector<8x32xf32>
    %313 = vector.extract_strided_slice %309 {offsets = [0, 96], sizes = [8, 32], strides = [1, 1]} : vector<8x128xf32> to vector<8x32xf32>
    %314 = arith.mulf %311, %305 : vector<8x32xf32>
    %315 = arith.mulf %310, %312 : vector<8x32xf32>
    %316 = arith.addf %314, %315 : vector<8x32xf32>
    %317 = math.tanh %316 : vector<8x32xf32>
    %318 = arith.mulf %313, %317 : vector<8x32xf32>
    %c8_105 = arith.constant 8 : index
    %c0_106 = arith.constant 0 : index
    %319 = vector.load %arg15[%c8_105, %c0_106] : memref<64x256xf32, #tpu.memory_space<vmem>>, vector<8x128xf32>
    %320 = arith.truncf %318 : vector<8x32xf32> to vector<8x32xbf16>
    %cst_107 = arith.constant dense<0.000000e+00> : vector<8x128xf32>
    %321 = tpu.matmul %320, %304, %cst_107 {dimension_numbers = #tpu.dot_dimension_numbers<[1], [0], [0], [1], [0, 0, 1, 1], [], []>} : vector<8x32xbf16>, vector<32x128xbf16>, vector<8x128xf32> -> vector<8x128xf32>
    %322 = arith.addf %319, %321 : vector<8x128xf32>
    %323 = math.tanh %322 : vector<8x128xf32>
    %324 = arith.mulf %323, %28 : vector<8x128xf32>
    %325 = arith.addf %324, %29 : vector<8x128xf32>
    %326 = vector.extract_strided_slice %325 {offsets = [0, 0], sizes = [8, 32], strides = [1, 1]} : vector<8x128xf32> to vector<8x32xf32>
    %327 = vector.extract_strided_slice %325 {offsets = [0, 32], sizes = [8, 32], strides = [1, 1]} : vector<8x128xf32> to vector<8x32xf32>
    %328 = vector.extract_strided_slice %325 {offsets = [0, 64], sizes = [8, 32], strides = [1, 1]} : vector<8x128xf32> to vector<8x32xf32>
    %329 = vector.extract_strided_slice %325 {offsets = [0, 96], sizes = [8, 32], strides = [1, 1]} : vector<8x128xf32> to vector<8x32xf32>
    %330 = arith.mulf %327, %316 : vector<8x32xf32>
    %331 = arith.mulf %326, %328 : vector<8x32xf32>
    %332 = arith.addf %330, %331 : vector<8x32xf32>
    %333 = math.tanh %332 : vector<8x32xf32>
    %334 = arith.mulf %329, %333 : vector<8x32xf32>
    %c16_108 = arith.constant 16 : index
    %c0_109 = arith.constant 0 : index
    %335 = vector.load %arg15[%c16_108, %c0_109] : memref<64x256xf32, #tpu.memory_space<vmem>>, vector<8x128xf32>
    %336 = arith.truncf %334 : vector<8x32xf32> to vector<8x32xbf16>
    %cst_110 = arith.constant dense<0.000000e+00> : vector<8x128xf32>
    %337 = tpu.matmul %336, %304, %cst_110 {dimension_numbers = #tpu.dot_dimension_numbers<[1], [0], [0], [1], [0, 0, 1, 1], [], []>} : vector<8x32xbf16>, vector<32x128xbf16>, vector<8x128xf32> -> vector<8x128xf32>
    %338 = arith.addf %335, %337 : vector<8x128xf32>
    %339 = math.tanh %338 : vector<8x128xf32>
    %340 = arith.mulf %339, %28 : vector<8x128xf32>
    %341 = arith.addf %340, %29 : vector<8x128xf32>
    %342 = vector.extract_strided_slice %341 {offsets = [0, 0], sizes = [8, 32], strides = [1, 1]} : vector<8x128xf32> to vector<8x32xf32>
    %343 = vector.extract_strided_slice %341 {offsets = [0, 32], sizes = [8, 32], strides = [1, 1]} : vector<8x128xf32> to vector<8x32xf32>
    %344 = vector.extract_strided_slice %341 {offsets = [0, 64], sizes = [8, 32], strides = [1, 1]} : vector<8x128xf32> to vector<8x32xf32>
    %345 = vector.extract_strided_slice %341 {offsets = [0, 96], sizes = [8, 32], strides = [1, 1]} : vector<8x128xf32> to vector<8x32xf32>
    %346 = arith.mulf %343, %332 : vector<8x32xf32>
    %347 = arith.mulf %342, %344 : vector<8x32xf32>
    %348 = arith.addf %346, %347 : vector<8x32xf32>
    %349 = math.tanh %348 : vector<8x32xf32>
    %350 = arith.mulf %345, %349 : vector<8x32xf32>
    %c24_111 = arith.constant 24 : index
    %c0_112 = arith.constant 0 : index
    %351 = vector.load %arg15[%c24_111, %c0_112] : memref<64x256xf32, #tpu.memory_space<vmem>>, vector<8x128xf32>
    %352 = arith.truncf %350 : vector<8x32xf32> to vector<8x32xbf16>
    %cst_113 = arith.constant dense<0.000000e+00> : vector<8x128xf32>
    %353 = tpu.matmul %352, %304, %cst_113 {dimension_numbers = #tpu.dot_dimension_numbers<[1], [0], [0], [1], [0, 0, 1, 1], [], []>} : vector<8x32xbf16>, vector<32x128xbf16>, vector<8x128xf32> -> vector<8x128xf32>
    %354 = arith.addf %351, %353 : vector<8x128xf32>
    %355 = math.tanh %354 : vector<8x128xf32>
    %356 = arith.mulf %355, %28 : vector<8x128xf32>
    %357 = arith.addf %356, %29 : vector<8x128xf32>
    %358 = vector.extract_strided_slice %357 {offsets = [0, 0], sizes = [8, 32], strides = [1, 1]} : vector<8x128xf32> to vector<8x32xf32>
    %359 = vector.extract_strided_slice %357 {offsets = [0, 32], sizes = [8, 32], strides = [1, 1]} : vector<8x128xf32> to vector<8x32xf32>
    %360 = vector.extract_strided_slice %357 {offsets = [0, 64], sizes = [8, 32], strides = [1, 1]} : vector<8x128xf32> to vector<8x32xf32>
    %361 = vector.extract_strided_slice %357 {offsets = [0, 96], sizes = [8, 32], strides = [1, 1]} : vector<8x128xf32> to vector<8x32xf32>
    %362 = arith.mulf %359, %348 : vector<8x32xf32>
    %363 = arith.mulf %358, %360 : vector<8x32xf32>
    %364 = arith.addf %362, %363 : vector<8x32xf32>
    %365 = math.tanh %364 : vector<8x32xf32>
    %366 = arith.mulf %361, %365 : vector<8x32xf32>
    %c32_114 = arith.constant 32 : index
    %c0_115 = arith.constant 0 : index
    %367 = vector.load %arg15[%c32_114, %c0_115] : memref<64x256xf32, #tpu.memory_space<vmem>>, vector<8x128xf32>
    %368 = arith.truncf %366 : vector<8x32xf32> to vector<8x32xbf16>
    %cst_116 = arith.constant dense<0.000000e+00> : vector<8x128xf32>
    %369 = tpu.matmul %368, %304, %cst_116 {dimension_numbers = #tpu.dot_dimension_numbers<[1], [0], [0], [1], [0, 0, 1, 1], [], []>} : vector<8x32xbf16>, vector<32x128xbf16>, vector<8x128xf32> -> vector<8x128xf32>
    %370 = arith.addf %367, %369 : vector<8x128xf32>
    %371 = math.tanh %370 : vector<8x128xf32>
    %372 = arith.mulf %371, %28 : vector<8x128xf32>
    %373 = arith.addf %372, %29 : vector<8x128xf32>
    %374 = vector.extract_strided_slice %373 {offsets = [0, 0], sizes = [8, 32], strides = [1, 1]} : vector<8x128xf32> to vector<8x32xf32>
    %375 = vector.extract_strided_slice %373 {offsets = [0, 32], sizes = [8, 32], strides = [1, 1]} : vector<8x128xf32> to vector<8x32xf32>
    %376 = vector.extract_strided_slice %373 {offsets = [0, 64], sizes = [8, 32], strides = [1, 1]} : vector<8x128xf32> to vector<8x32xf32>
    %377 = vector.extract_strided_slice %373 {offsets = [0, 96], sizes = [8, 32], strides = [1, 1]} : vector<8x128xf32> to vector<8x32xf32>
    %378 = arith.mulf %375, %364 : vector<8x32xf32>
    %379 = arith.mulf %374, %376 : vector<8x32xf32>
    %380 = arith.addf %378, %379 : vector<8x32xf32>
    %381 = math.tanh %380 : vector<8x32xf32>
    %382 = arith.mulf %377, %381 : vector<8x32xf32>
    %c40_117 = arith.constant 40 : index
    %c0_118 = arith.constant 0 : index
    %383 = vector.load %arg15[%c40_117, %c0_118] : memref<64x256xf32, #tpu.memory_space<vmem>>, vector<8x128xf32>
    %384 = arith.truncf %382 : vector<8x32xf32> to vector<8x32xbf16>
    %cst_119 = arith.constant dense<0.000000e+00> : vector<8x128xf32>
    %385 = tpu.matmul %384, %304, %cst_119 {dimension_numbers = #tpu.dot_dimension_numbers<[1], [0], [0], [1], [0, 0, 1, 1], [], []>} : vector<8x32xbf16>, vector<32x128xbf16>, vector<8x128xf32> -> vector<8x128xf32>
    %386 = arith.addf %383, %385 : vector<8x128xf32>
    %387 = math.tanh %386 : vector<8x128xf32>
    %388 = arith.mulf %387, %28 : vector<8x128xf32>
    %389 = arith.addf %388, %29 : vector<8x128xf32>
    %390 = vector.extract_strided_slice %389 {offsets = [0, 0], sizes = [8, 32], strides = [1, 1]} : vector<8x128xf32> to vector<8x32xf32>
    %391 = vector.extract_strided_slice %389 {offsets = [0, 32], sizes = [8, 32], strides = [1, 1]} : vector<8x128xf32> to vector<8x32xf32>
    %392 = vector.extract_strided_slice %389 {offsets = [0, 64], sizes = [8, 32], strides = [1, 1]} : vector<8x128xf32> to vector<8x32xf32>
    %393 = vector.extract_strided_slice %389 {offsets = [0, 96], sizes = [8, 32], strides = [1, 1]} : vector<8x128xf32> to vector<8x32xf32>
    %394 = arith.mulf %391, %380 : vector<8x32xf32>
    %395 = arith.mulf %390, %392 : vector<8x32xf32>
    %396 = arith.addf %394, %395 : vector<8x32xf32>
    %397 = math.tanh %396 : vector<8x32xf32>
    %398 = arith.mulf %393, %397 : vector<8x32xf32>
    %c48_120 = arith.constant 48 : index
    %c0_121 = arith.constant 0 : index
    %399 = vector.load %arg15[%c48_120, %c0_121] : memref<64x256xf32, #tpu.memory_space<vmem>>, vector<8x128xf32>
    %400 = arith.truncf %398 : vector<8x32xf32> to vector<8x32xbf16>
    %cst_122 = arith.constant dense<0.000000e+00> : vector<8x128xf32>
    %401 = tpu.matmul %400, %304, %cst_122 {dimension_numbers = #tpu.dot_dimension_numbers<[1], [0], [0], [1], [0, 0, 1, 1], [], []>} : vector<8x32xbf16>, vector<32x128xbf16>, vector<8x128xf32> -> vector<8x128xf32>
    %402 = arith.addf %399, %401 : vector<8x128xf32>
    %403 = math.tanh %402 : vector<8x128xf32>
    %404 = arith.mulf %403, %28 : vector<8x128xf32>
    %405 = arith.addf %404, %29 : vector<8x128xf32>
    %406 = vector.extract_strided_slice %405 {offsets = [0, 0], sizes = [8, 32], strides = [1, 1]} : vector<8x128xf32> to vector<8x32xf32>
    %407 = vector.extract_strided_slice %405 {offsets = [0, 32], sizes = [8, 32], strides = [1, 1]} : vector<8x128xf32> to vector<8x32xf32>
    %408 = vector.extract_strided_slice %405 {offsets = [0, 64], sizes = [8, 32], strides = [1, 1]} : vector<8x128xf32> to vector<8x32xf32>
    %409 = vector.extract_strided_slice %405 {offsets = [0, 96], sizes = [8, 32], strides = [1, 1]} : vector<8x128xf32> to vector<8x32xf32>
    %410 = arith.mulf %407, %396 : vector<8x32xf32>
    %411 = arith.mulf %406, %408 : vector<8x32xf32>
    %412 = arith.addf %410, %411 : vector<8x32xf32>
    %413 = math.tanh %412 : vector<8x32xf32>
    %414 = arith.mulf %409, %413 : vector<8x32xf32>
    %c56_123 = arith.constant 56 : index
    %c0_124 = arith.constant 0 : index
    %415 = vector.load %arg15[%c56_123, %c0_124] : memref<64x256xf32, #tpu.memory_space<vmem>>, vector<8x128xf32>
    %416 = arith.truncf %414 : vector<8x32xf32> to vector<8x32xbf16>
    %cst_125 = arith.constant dense<0.000000e+00> : vector<8x128xf32>
    %417 = tpu.matmul %416, %304, %cst_125 {dimension_numbers = #tpu.dot_dimension_numbers<[1], [0], [0], [1], [0, 0, 1, 1], [], []>} : vector<8x32xbf16>, vector<32x128xbf16>, vector<8x128xf32> -> vector<8x128xf32>
    %418 = arith.addf %415, %417 : vector<8x128xf32>
    %419 = math.tanh %418 : vector<8x128xf32>
    %420 = arith.mulf %419, %28 : vector<8x128xf32>
    %421 = arith.addf %420, %29 : vector<8x128xf32>
    %422 = vector.extract_strided_slice %421 {offsets = [0, 0], sizes = [8, 32], strides = [1, 1]} : vector<8x128xf32> to vector<8x32xf32>
    %423 = vector.extract_strided_slice %421 {offsets = [0, 32], sizes = [8, 32], strides = [1, 1]} : vector<8x128xf32> to vector<8x32xf32>
    %424 = vector.extract_strided_slice %421 {offsets = [0, 64], sizes = [8, 32], strides = [1, 1]} : vector<8x128xf32> to vector<8x32xf32>
    %425 = vector.extract_strided_slice %421 {offsets = [0, 96], sizes = [8, 32], strides = [1, 1]} : vector<8x128xf32> to vector<8x32xf32>
    %426 = arith.mulf %423, %412 : vector<8x32xf32>
    %427 = arith.mulf %422, %424 : vector<8x32xf32>
    %428 = arith.addf %426, %427 : vector<8x32xf32>
    %429 = math.tanh %428 : vector<8x32xf32>
    %430 = arith.mulf %425, %429 : vector<8x32xf32>
    %431 = arith.truncf %430 : vector<8x32xf32> to vector<8x32xbf16>
    %c0_126 = arith.constant 0 : index
    %c0_127 = arith.constant 0 : index
    %432 = vector.load %arg11[%c0_126, %c0_127] : memref<32x128xbf16, #tpu.memory_space<vmem>>, vector<32x128xbf16>
    %cst_128 = arith.constant dense<0.000000e+00> : vector<8x128xf32>
    %433 = tpu.matmul %431, %432, %cst_128 {dimension_numbers = #tpu.dot_dimension_numbers<[1], [0], [0], [1], [0, 0, 1, 1], [], []>} : vector<8x32xbf16>, vector<32x128xbf16>, vector<8x128xf32> -> vector<8x128xf32>
    %434 = arith.truncf %297 : vector<8x32xf32> to vector<8x32xbf16>
    %c0_129 = arith.constant 0 : index
    %c0_130 = arith.constant 0 : index
    %435 = vector.load %arg12[%c0_129, %c0_130] : memref<32x128xbf16, #tpu.memory_space<vmem>>, vector<32x128xbf16>
    %cst_131 = arith.constant dense<0.000000e+00> : vector<8x128xf32>
    %436 = tpu.matmul %434, %435, %cst_131 {dimension_numbers = #tpu.dot_dimension_numbers<[1], [0], [0], [1], [0, 0, 1, 1], [], []>} : vector<8x32xbf16>, vector<32x128xbf16>, vector<8x128xf32> -> vector<8x128xf32>
    %437 = arith.addf %433, %436 : vector<8x128xf32>
    %c0_132 = arith.constant 0 : index
    %c0_133 = arith.constant 0 : index
    %438 = vector.load %arg13[%c0_132, %c0_133] : memref<1x128xf32, #tpu.memory_space<vmem>>, vector<1x128xf32>
    %439 = vector.broadcast %438 : vector<1x128xf32> to vector<8x128xf32>
    %440 = arith.addf %437, %439 : vector<8x128xf32>
    %c0_134 = arith.constant 0 : index
    %c0_135 = arith.constant 0 : index
    %441 = vector.load %arg14[%c0_134, %c0_135] : memref<8x128xf32, #tpu.memory_space<vmem>>, vector<8x128xf32>
    tpu.vector_store %arg14[%c0_134, %c0_135], %440 {strides = array<i32>} : memref<8x128xf32, #tpu.memory_space<vmem>>, vector<8x128xf32>,
    return
  }
}

</mosaic_0001>

<bundles_post_ra>
// kernel: brnn_forward.1
= control target key start
LH: loop header
LB: loop body
LE: loop exit
PB: predicated region body
PF: predicated region fallthrough
CT: control target
= control target key end

     0   :  { %19 = vsyncpa [#allocation5], 0  ;;  %s2633_s0 = inlined_call_operand.vmem [shape: bf16[64,16], index: 0, kind: input, shape index: {}]   ;;  %s2634_s1 = inlined_call_operand.hbm [shape: bf16[16,128], index: 1, kind: input, shape index: {}]   ;;  %s2635_s2 = inlined_call_operand.vmem [shape: f32[1,128], index: 2, kind: input, shape index: {}]   ;;  %s2636_s3 = inlined_call_operand.hbm [shape: bf16[16,128], index: 3, kind: input, shape index: {}]   ;;  %s2637_s4 = inlined_call_operand.vmem [shape: f32[1,128], index: 4, kind: input, shape index: {}]   ;;  %s2638_s5 = inlined_call_operand.vmem [shape: bf16[64,256], index: 5, kind: input, shape index: {}]   ;;  %s2639_s6 = inlined_call_operand.hbm [shape: bf16[64,128], index: 6, kind: input, shape index: {}]   ;;  %s2640_s7 = inlined_call_operand.vmem [shape: f32[1,128], index: 7, kind: input, shape index: {}]   ;;  %s2641_s8 = inlined_call_operand.hbm [shape: bf16[64,128], index: 8, kind: input, shape index: {}]   ;;  %s2642_s9 = inlined_call_operand.vmem [shape: f32[1,128], index: 9, kind: input, shape index: {}]   ;;  %s2643_s10 = inlined_call_operand.hbm [shape: bf16[64,256], index: 10, kind: input, shape index: {}]   ;;  %s2644_s11 = inlined_call_operand.vmem [shape: bf16[32,128], index: 11, kind: input, shape index: {}]   ;;  %s2645_s12 = inlined_call_operand.hbm [shape: bf16[32,128], index: 12, kind: input, shape index: {}]   ;;  %s2646_s13 = inlined_call_operand.vmem [shape: f32[1,128], index: 13, kind: input, shape index: {}]   ;;  %s2647_s14 = inlined_call_operand.vmem [shape: f32[8,128], index: 14, kind: output, shape index: {}]  }
   0x1   :  { %20 = vsyncpa [#allocation7], 0 }
   0x2   :  { %21 = vsyncpa [#allocation10], 0 }
   0x3   :  { %22 = vsyncpa [#allocation13], 0  ;;  %s44_s15 = sshll.u32 %s2636_s3, 4  ;;  %s2067_s16 = smov [#allocation6]   ;;  %s45_s15 = int_to_ptr.hbm [resolvable:$true] %s44_s15 }
   0x4   :  { %s46_s17 = sshll.u32 %s2067_s16, 4  ;;  %s76_s20 = sshll.u32 %s2641_s8, 4  ;;  %s47_s17 = int_to_ptr.vmem [resolvable:$true] %s46_s17  ;;  %s77_s20 = int_to_ptr.hbm [resolvable:$true] %s76_s20 }
   0x5   :  { %s2068_s21 = smov 64   ;;  %s2069_s22 = smov 4  }
   0x6   :  { %52 = dma.hbm_to_vmem [thread:$0]  %s45_s15, 128, %s47_s17, [#allocation7], %s2068_s21, %s2068_s21, %s2069_s22  }
   0x7   :  { %s2070_s23 = smov [#allocation9]   ;;  %s29_s3 = sshll.u32 %s2634_s1, 4  ;;  %s30_s3 = int_to_ptr.hbm [resolvable:$true] %s29_s3 }
   0x8   :  { %s78_s24 = sshll.u32 %s2070_s23, 4  ;;  %s61_s28 = sshll.u32 %s2639_s6, 4  ;;  %s79_s24 = int_to_ptr.vmem [resolvable:$true] %s78_s24  ;;  %s62_s28 = int_to_ptr.hbm [resolvable:$true] %s61_s28 }
   0x9   :  { %84 = dma.hbm_to_vmem [thread:$0]  %s77_s20, 512, %s79_s24, [#allocation10], %s2068_s21, %s2068_s21, %s2069_s22  }
   0xa   :  { %s2071_s29 = smov [#allocation4]   ;;  %s2072_s15 = smov [#allocation8]  }
   0xb   :  { %s31_s30 = sshll.u32 %s2071_s29, 4  ;;  %s63_s1 = sshll.u32 %s2072_s15, 4  ;;  %s32_s30 = int_to_ptr.vmem [resolvable:$true] %s31_s30  ;;  %s64_s1 = int_to_ptr.vmem [resolvable:$true] %s63_s1 }
   0xc   :  { %37 = dma.hbm_to_vmem [thread:$0]  %s30_s3, 128, %s32_s30, [#allocation5], %s2068_s21, %s2068_s21, %s2069_s22  }
   0xd   :  { %s91_s18 = sshll.u32 %s2643_s10, 4  ;;  %s2073_s6 = smov [#allocation11]   ;;  %s92_s18 = int_to_ptr.hbm [resolvable:$true] %s91_s18 }
   0xe   :  { %69 = dma.hbm_to_vmem [thread:$0]  %s62_s28, 512, %s64_s1, [#allocation7], %s2068_s21, %s2068_s21, %s2069_s22  }
   0xf   :  { %s93_s19 = sshll.u32 %s2073_s6, 4  ;;  %s106_s24 = sshll.u32 %s2645_s12, 4  ;;  %s94_s19 = int_to_ptr.vmem [resolvable:$true] %s93_s19  ;;  %s107_s24 = int_to_ptr.hbm [resolvable:$true] %s106_s24 }
  0x10   :  { %s2074_s25 = smov 128   ;;  %s2075_s26 = smov 8  }
  0x11   :  { %99 = dma.hbm_to_vmem [thread:$0]  %s92_s18, 1024, %s94_s19, [#allocation10], %s2074_s25, %s2074_s25, %s2075_s26  }
  0x12   :  { %s2076_s3 = smov [#allocation12]  }
  0x13   :  { %s108_s8 = sshll.u32 %s2076_s3, 4  ;;  %s109_s8 = int_to_ptr.vmem [resolvable:$true] %s108_s8 }
  0x14   :  { %114 = dma.hbm_to_vmem [thread:$0]  %s107_s24, 256, %s109_s8, [#allocation13], %s2068_s21, %s2068_s21, %s2069_s22  }
  0x15   :  { %2059 = dma.done.wait [#allocation5], 128  }
  0x16   :  { %2060 = vsyncadd [#allocation5], 4294967168 }
  0x17   :  { %2061 = dma.done.wait [#allocation7], 640  }
  0x18   :  { %2062 = vsyncadd [#allocation7], 4294966656 }
  0x19   :  { %2063 = dma.done.wait [#allocation10], 1536  }
  0x1a   :  { %2064 = vsyncadd [#allocation10], 4294965760 }
  0x1b   :  { %2065 = dma.done.wait [#allocation13], 256  }
  0x1c   :  { %2066 = vsyncadd [#allocation13], 4294967040  ;;  %v1772_v0 = vld [vmem:[#allocation4] sm:$0xff]  ;;  %v1773_v1 = vld [vmem:[#allocation6] sm:$0xff]  ;;  %vm219_vm0 = vcmask 130048   ;;  %v142_v6 = vlaneseq  ;;  %v2077_v14 = vmov 0.5  }
  0x1d   :  { %v1768_v2 = vld [vmem:[%s2633_s0] sm:$0xff]  ;;  %239 = vmatpush.bf16.msra.mxu0 %v1772_v0  ;;  %288 = vmatpush.bf16.msra.mxu1 %v1773_v1  ;;  %v1769_v3 = vld [vmem:[%s2633_s0 + $0x8] sm:$0xff]  ;;  %v1770_v4 = vld [vmem:[%s2633_s0 + $0x10] sm:$0xff]  ;;  %vm372_vm7 = vcmask 261120   ;;  %vm378_vm8 = vcmask 523520   ;;  %vm424_vm9 = vcmask 523264  }
  0x1e   :  { %v1771_v5 = vld [vmem:[%s2633_s0 + $0x18] sm:$0xff]  ;;  %v143_v7 = vand.u32 127, %v142_v6  ;;  %v2203_v8 = vld [vmem:[%s2635_s2] ss:$0 sm:$0xff]  ;;  %s2078_s0 = smov 32  }
  0x1f   :  { %v1810_v9 = vld [vmem:[%s2637_s4] ss:$0 sm:$0xff]  ;;  %v1678_v57 = vld [vmem:[%s2638_s5 + $0x30] sm:$0xf]  ;;  %v1781_v58 = vld [vmem:[%s2638_s5 + $0x34] sm:$0xf0] }
  0x20   :  { %1640 = vmatmul.msk.bf16.vlgmr.msra.gmra.mxu0 %vm219_vm0, %v1768_v2  ;;  %1648 = vmatmul.msk.bf16.vlgmr.msra.gmra.mxu1 %vm219_vm0, %v1768_v2  ;;  %vm169_vm1 = vcmp.ge.s32.totalorder %v143_v7, 64  ;;  %vm171_vm2 = vcmp.lt.s32.totalorder %v143_v7, 96  ;;  %v144_v32 = vadd.s32 128, %v143_v7  ;;  %v1780_v59 = vld [vmem:[%s2638_s5 + $0x34] sm:$0xf]  ;;  %v2258_v60 = vor.u32 %v1781_v58, %v1678_v57 }
  0x21   :  { %vm173_vm3 = vmand %vm169_vm1, %vm171_vm2  ;;  %v1680_v61 = vld [vmem:[%s2638_s5 + $0x38] sm:$0xf0]  ;;  %v1670_v62 = vld [vmem:[%s2638_s5 + $0x20] sm:$0xf] }
  0x22   :  { %v2211_v15 = vsel %vm173_vm3, 1.0, %v2077_v14  ;;  %v2215_v19 = vsel %vm173_vm3, 0.0, %v2077_v14  ;;  %v156_v33 = vand.u32 127, %v144_v32  ;;  %v1779_v63 = vld [vmem:[%s2638_s5 + $0x24] sm:$0xf0]  ;;  %v2269_v0 = vor.u32 %v1780_v59, %v1680_v61  ;;  %432 = vmatpush.bf16.msra.mxu2 %v2258_v60  ;;  %772 = vmatpush.bf16.msrb.mxu0 %v2258_v60 }
  0x23   :  { %v1778_v1 = vld [vmem:[%s2638_s5 + $0x24] sm:$0xf]  ;;  %v1672_v2 = vld [vmem:[%s2638_s5 + $0x28] sm:$0xf0]  ;;  %v1777_v6 = vld [vmem:[%s2638_s5 + $0x14] sm:$0xf0] }
  0x24   :  { %vm170_vm4 = vcmp.ge.s32.totalorder %v156_v33, 64  ;;  %vm172_vm5 = vcmp.lt.s32.totalorder %v156_v33, 96  ;;  %445 = vmatpush.bf16.msra.mxu3 %v2269_v0  ;;  %785 = vmatpush.bf16.msrb.mxu1 %v2269_v0  ;;  %v1776_v7 = vld [vmem:[%s2638_s5 + $0x14] sm:$0xf] }
  0x25   :  { %vm174_vm6 = vmand %vm170_vm4, %vm172_vm5 }
  0x26   :  { %v2230_v36 = vsel %vm174_vm6, 1.0, %v2077_v14  ;;  %v2232_v38 = vsel %vm174_vm6, 0.0, %v2077_v14  ;;  %v1654_v14 = vld [vmem:[%s2638_s5] sm:$0xf] }
  0x30   :  { %1649 = vmatmul.msk.bf16.gmra.mxu1 %vm219_vm0, %v1769_v3  ;;  %1641 = vmatmul.msk.bf16.gmra.mxu0 %vm219_vm0, %v1769_v3  ;;  %v2278_v3 = vor.u32 %v1779_v63, %v1670_v62 }
  0x32   :  { %433 = vmatpush.bf16.msra.mxu2 %v2278_v3  ;;  %773 = vmatpush.bf16.msrb.mxu0 %v2278_v3 }
  0x40   :  { %1650 = vmatmul.msk.bf16.gmra.mxu1 %vm219_vm0, %v1770_v4  ;;  %1642 = vmatmul.msk.bf16.gmra.mxu0 %vm219_vm0, %v1770_v4  ;;  %v2282_v4 = vor.u32 %v1778_v1, %v1672_v2 }
  0x42   :  { %446 = vmatpush.bf16.msra.mxu3 %v2282_v4  ;;  %786 = vmatpush.bf16.msrb.mxu1 %v2282_v4 }
  0x50   :  { %1651 = vmatmul.msk.bf16.gmra.mxu1 %vm219_vm0, %v1771_v5  ;;  %1643 = vmatmul.msk.bf16.gmra.mxu0 %vm219_vm0, %v1771_v5  ;;  %v1662_v5 = vld [vmem:[%s2638_s5 + $0x10] sm:$0xf] }
  0x9d   :  { %v241_v10 = vpop.f32.mrf.mxu0  ;;  %v290_v11 = vpop.f32.mrf.mxu1 }
  0x9e   :  { %v242_v12 = vadd.f32 %v2203_v8, %v241_v10  ;;  %v2209_v13 = vadd.f32 %v1810_v9, %v290_v11  ;;  %v2298_v10 = vor.u32 %v1777_v6, %v1662_v5 }
  0xa0   :  { %1814 = vtanh.f32 %v242_v12  ;;  %434 = vmatpush.bf16.msra.mxu2 %v2298_v10  ;;  %774 = vmatpush.bf16.msrb.mxu0 %v2298_v10 }
  0xa5   :  { %v292_v16 = vpop.f32.mrf.mxu1 }
  0xa6   :  { %v1815_v17 = vpop.eup %1814  ;;  %v2213_v18 = vadd.f32 %v1810_v9, %v292_v16  ;;  %v1775_v16 = vld [vmem:[%s2638_s5 + $0x4] sm:$0xf0] }
  0xa7   :  { %v330_v20 = vmul.f32 %v1815_v17, %v2211_v15  ;;  %v1774_v17 = vld [vmem:[%s2638_s5 + $0x4] sm:$0xf] }
  0xa9   :  { %v332_v21 = vadd.f32 %v330_v20, %v2215_v19  ;;  %v2319_v20 = vor.u32 %v1775_v16, %v1654_v14 }
  0xab   :  { %336 = vrot.lane.b32.xlu0 %v332_v21, %s2068_s21  ;;  %v334_v45 = vmul.f32 0.0, %v332_v21  ;;  %435 = vmatpush.bf16.msra.mxu2 %v2319_v20 }
  0xac   :  { %775 = vmatpush.bf16.msrb.mxu0 %v2319_v20 }
  0xad   :  { %v295_v22 = vpop.f32.mrf.mxu1 }
  0xae   :  { %v2220_v23 = vadd.f32 %v1810_v9, %v295_v22 }
  0xaf   :  { %517 = vmatpush.bf16.msrb.mxu2 %v2258_v60 }
  0xb0   :  { %942 = vmatpush.bf16.msra.mxu0 %v2258_v60 }
  0xb3   :  { %518 = vmatpush.bf16.msrb.mxu2 %v2278_v3 }
  0xb4   :  { %943 = vmatpush.bf16.msra.mxu0 %v2278_v3 }
  0xb5   :  { %v297_v24 = vpop.f32.mrf.mxu1 }
  0xb6   :  { %v2222_v25 = vadd.f32 %v1810_v9, %v297_v24 }
  0xb7   :  { %519 = vmatpush.bf16.msrb.mxu2 %v2298_v10 }
  0xb8   :  { %944 = vmatpush.bf16.msra.mxu0 %v2298_v10 }
  0xbb   :  { %520 = vmatpush.bf16.msrb.mxu2 %v2319_v20 }
  0xbc   :  { %945 = vmatpush.bf16.msra.mxu0 %v2319_v20 }
  0xbd   :  { %v300_v26 = vpop.f32.mrf.mxu1 }
  0xbe   :  { %v2224_v27 = vadd.f32 %v1810_v9, %v300_v26 }
  0xc5   :  { %v302_v28 = vpop.f32.mrf.mxu1 }
  0xc6   :  { %v2226_v29 = vadd.f32 %v1810_v9, %v302_v28 }
  0xcd   :  { %v305_v30 = vpop.f32.mrf.mxu1 }
  0xce   :  { %v2228_v31 = vadd.f32 %v1810_v9, %v305_v30  ;;  %v243_v30 = vpop.f32.mrf.mxu0 }
  0xcf   :  { %v244_v32 = vadd.f32 %v2203_v8, %v243_v30 }
  0xd5   :  { %v307_v34 = vpop.f32.mrf.mxu1 }
  0xd6   :  { %v308_v35 = vadd.f32 %v1810_v9, %v307_v34  ;;  %v1664_v9 = vld [vmem:[%s2638_s5 + $0x18] sm:$0xf0]  ;;  %v246_v6 = vpop.f32.mrf.mxu0 }
  0xd7   :  { %v2302_v11 = vor.u32 %v1776_v7, %v1664_v9  ;;  %v247_v7 = vadd.f32 %v2203_v8, %v246_v6 }
  0xd8   :  { %1816 = vtanh.f32 %v308_v35 }
  0xd9   :  { %447 = vmatpush.bf16.msra.mxu3 %v2302_v11  ;;  %787 = vmatpush.bf16.msrb.mxu1 %v2302_v11 }
  0xde   :  { %v1817_v37 = vpop.eup %1816 }
  0xdf   :  { %v331_v39 = vmul.f32 %v1817_v37, %v2230_v36 }
  0xe1   :  { %v333_v40 = vadd.f32 %v331_v39, %v2232_v38 }
  0xe3   :  { %353 = vrot.lane.b32.xlu0 %v333_v40, %s2068_s21  ;;  %v351_v49 = vmul.f32 0.0, %v333_v40 }
 0x11d   :  { %v337_v41 = vpop.permute.xlu0 %336 }
 0x11e   :  { %v339_v42 = vmul.f32 %v337_v41, %v332_v21 }
 0x120   :  { %341 = vrot.lane.b32.xlu1 %v339_v42, %s2078_s0 }
 0x155   :  { %v354_v43 = vpop.permute.xlu0 %353 }
 0x156   :  { %v356_v44 = vmul.f32 %v354_v43, %v333_v40 }
 0x158   :  { %358 = vrot.lane.b32.xlu1 %v356_v44, %s2078_s0 }
 0x192   :  { %v342_v46 = vpop.permute.xlu1 %341 }
 0x193   :  { %v2239_v47 = vadd.f32 %v342_v46, %v334_v45 }
 0x195   :  { %1818 = vtanh.f32 %v2239_v47 }
 0x19b   :  { %v1819_v48 = vpop.eup %1818 }
 0x19c   :  { %347 = vrot.lane.b32.xlu2 %v1819_v48, %s2068_s21 }
 0x1ca   :  { %v359_v50 = vpop.permute.xlu1 %358 }
 0x1cb   :  { %v2243_v51 = vadd.f32 %v359_v50, %v351_v49 }
 0x1cd   :  { %1820 = vtanh.f32 %v2243_v51 }
 0x1d3   :  { %v1821_v52 = vpop.eup %1820 }
 0x1d4   :  { %364 = vrot.lane.b32.xlu2 %v1821_v52, %s2068_s21 }
 0x1f6   :  { %v348_v53 = vpop.permute.xlu2 %347 }
 0x1f7   :  { %v350_v54 = vmul.f32 %v348_v53, %v332_v21  ;;  %v1656_v21 = vld [vmem:[%s2638_s5 + $0x8] sm:$0xf0] }
 0x1f8   :  { %v2324_v22 = vor.u32 %v1774_v17, %v1656_v21 }
 0x1f9   :  { %369 = vrot.lane.b32.xlu0 %v350_v54, %s2078_s0 }
 0x1fa   :  { %448 = vmatpush.bf16.msra.mxu3 %v2324_v22  ;;  %788 = vmatpush.bf16.msrb.mxu1 %v2324_v22 }
 0x1fe   :  { %530 = vmatpush.bf16.msrb.mxu3 %v2269_v0  ;;  %955 = vmatpush.bf16.msra.mxu1 %v2269_v0 }
 0x202   :  { %531 = vmatpush.bf16.msrb.mxu3 %v2282_v4  ;;  %956 = vmatpush.bf16.msra.mxu1 %v2282_v4 }
 0x206   :  { %532 = vmatpush.bf16.msrb.mxu3 %v2302_v11  ;;  %957 = vmatpush.bf16.msra.mxu1 %v2302_v11 }
 0x20a   :  { %533 = vmatpush.bf16.msrb.mxu3 %v2324_v22  ;;  %958 = vmatpush.bf16.msra.mxu1 %v2324_v22 }
 0x22e   :  { %v365_v55 = vpop.permute.xlu2 %364 }
 0x22f   :  { %v367_v56 = vmul.f32 %v365_v55, %v333_v40 }
 0x231   :  { %375 = vrot.lane.b32.xlu1 %v367_v56, %s2068_s21 }
 0x26b   :  { %v370_v12 = vpop.permute.xlu0 %369 }
 0x26c   :  { %373 = vst.msk [vmem:[#allocation3] sm:$0xff] %vm372_vm7, %v370_v12 }
 0x2a3   :  { %v376_v24 = vpop.permute.xlu1 %375 }
 0x2a4   :  { %379 = vst.msk [vmem:[#allocation3 + $0x38] sm:$0xff] %vm378_vm8, %v376_v24  ;;  %v380_v26 = vsel %vm372_vm7, %v370_v12, %v376_v24 }
 0x2a5   :  { %v381_v28 = vpack.c.bf16 %v380_v26, %v380_v26 }
 0x2a7   :  { %1684 = vmatmul.msk.bf16.vlgmr.msra.gmra.mxu2 %vm424_vm9, %v381_v28  ;;  %1685 = vmatmul.msk.bf16.vlgmr.msra.gmra.mxu3 %vm424_vm9, %v381_v28 }
 0x2a8   :  { %602 = vmatpush.bf16.msra.mxu2 %v2258_v60  ;;  %615 = vmatpush.bf16.msra.mxu3 %v2269_v0 }
 0x2ac   :  { %603 = vmatpush.bf16.msra.mxu2 %v2278_v3  ;;  %616 = vmatpush.bf16.msra.mxu3 %v2282_v4 }
 0x2b0   :  { %604 = vmatpush.bf16.msra.mxu2 %v2298_v10  ;;  %617 = vmatpush.bf16.msra.mxu3 %v2302_v11 }
 0x2b4   :  { %605 = vmatpush.bf16.msra.mxu2 %v2319_v20  ;;  %618 = vmatpush.bf16.msra.mxu3 %v2324_v22 }
 0x32a   :  { %v437_v33 = vpop.f32.mrf.mxu2  ;;  %v450_v34 = vpop.f32.mrf.mxu3 }
 0x32b   :  { %v454_v35 = vadd.f32 %v437_v33, %v244_v32  ;;  %v455_v37 = vadd.f32 %v450_v34, %v2228_v31 }
 0x32d   :  { %1822 = vtanh.f32 %v454_v35 }
 0x32e   :  { %1824 = vtanh.f32 %v455_v37 }
 0x332   :  { %v439_v39 = vpop.f32.mrf.mxu2  ;;  %v452_v40 = vpop.f32.mrf.mxu3 }
 0x333   :  { %v1823_v41 = vpop.eup %1822 }
 0x334   :  { %v1825_v42 = vpop.eup %1824  ;;  %v458_v43 = vmul.f32 %v1823_v41, %v2211_v15 }
 0x335   :  { %v459_v44 = vmul.f32 %v1825_v42, %v2230_v36 }
 0x336   :  { %v460_v45 = vadd.f32 %v458_v43, %v2215_v19 }
 0x337   :  { %v461_v46 = vadd.f32 %v459_v44, %v2232_v38 }
 0x338   :  { %464 = vrot.lane.b32.xlu2 %v460_v45, %s2068_s21  ;;  %v462_v52 = vmul.f32 %v460_v45, %v2239_v47 }
 0x339   :  { %481 = vrot.lane.b32.xlu0 %v461_v46, %s2068_s21  ;;  %v479_v54 = vmul.f32 %v461_v46, %v2243_v51 }
 0x392   :  { %v465_v48 = vpop.permute.xlu2 %464 }
 0x393   :  { %v467_v31 = vmul.f32 %v465_v48, %v460_v45 }
 0x395   :  { %469 = vrot.lane.b32.xlu1 %v467_v31, %s2078_s0 }
 0x3ab   :  { %v482_v49 = vpop.permute.xlu0 %481 }
 0x3ac   :  { %v484_v50 = vmul.f32 %v482_v49, %v461_v46 }
 0x3ae   :  { %486 = vrot.lane.b32.xlu2 %v484_v50, %s2078_s0 }
 0x407   :  { %v470_v53 = vpop.permute.xlu1 %469 }
 0x408   :  { %v472_v55 = vadd.f32 %v470_v53, %v462_v52  ;;  %v487_v56 = vpop.permute.xlu2 %486 }
 0x409   :  { %v489_v57 = vadd.f32 %v487_v56, %v479_v54  ;;  %v248_v56 = vpop.f32.mrf.mxu0 }
 0x40a   :  { %1826 = vtanh.f32 %v472_v55 }
 0x40b   :  { %1828 = vtanh.f32 %v489_v57 }
 0x410   :  { %v1827_v58 = vpop.eup %1826 }
 0x411   :  { %v1829_v59 = vpop.eup %1828  ;;  %475 = vrot.lane.b32.xlu0 %v1827_v58, %s2068_s21 }
 0x412   :  { %492 = vrot.lane.b32.xlu1 %v1829_v59, %s2068_s21 }
 0x483   :  { %v476_v61 = vpop.permute.xlu0 %475 }
 0x484   :  { %v493_v62 = vpop.permute.xlu1 %492  ;;  %v478_v63 = vmul.f32 %v476_v61, %v460_v45 }
 0x485   :  { %v495_v1 = vmul.f32 %v493_v62, %v461_v46 }
 0x486   :  { %497 = vrot.lane.b32.xlu2 %v478_v63, %s2078_s0 }
 0x487   :  { %502 = vrot.lane.b32.xlu0 %v495_v1, %s2068_s21 }
 0x4e0   :  { %v498_v47 = vpop.permute.xlu2 %497 }
 0x4e1   :  { %500 = vst.msk [vmem:[#allocation3 + $0x8] sm:$0xff] %vm372_vm7, %v498_v47 }
 0x4f9   :  { %v503_v51 = vpop.permute.xlu0 %502 }
 0x4fa   :  { %505 = vst.msk [vmem:[#allocation3 + $0x30] sm:$0xff] %vm378_vm8, %v503_v51  ;;  %v506_v2 = vsel %vm372_vm7, %v498_v47, %v503_v51 }
 0x4fb   :  { %v507_v5 = vpack.c.bf16 %v506_v2, %v506_v2 }
 0x4fd   :  { %1686 = vmatmul.msk.bf16.vlgmr.msrb.gmra.mxu2 %vm424_vm9, %v507_v5  ;;  %1687 = vmatmul.msk.bf16.vlgmr.msrb.gmra.mxu3 %vm424_vm9, %v507_v5 }
 0x4fe   :  { %700 = vmatpush.bf16.msrb.mxu3 %v2269_v0  ;;  %687 = vmatpush.bf16.msrb.mxu2 %v2258_v60 }
 0x502   :  { %701 = vmatpush.bf16.msrb.mxu3 %v2282_v4  ;;  %688 = vmatpush.bf16.msrb.mxu2 %v2278_v3 }
 0x506   :  { %702 = vmatpush.bf16.msrb.mxu3 %v2302_v11  ;;  %689 = vmatpush.bf16.msrb.mxu2 %v2298_v10 }
 0x50a   :  { %703 = vmatpush.bf16.msrb.mxu3 %v2324_v22  ;;  %690 = vmatpush.bf16.msrb.mxu2 %v2319_v20 }
 0x580   :  { %v522_v9 = vpop.f32.mrf.mxu2  ;;  %v535_v12 = vpop.f32.mrf.mxu3 }
 0x581   :  { %v539_v14 = vadd.f32 %v522_v9, %v247_v7  ;;  %v540_v16 = vadd.f32 %v535_v12, %v2226_v29 }
 0x583   :  { %1830 = vtanh.f32 %v539_v14 }
 0x584   :  { %1832 = vtanh.f32 %v540_v16 }
 0x588   :  { %v524_v17 = vpop.f32.mrf.mxu2  ;;  %v537_v21 = vpop.f32.mrf.mxu3 }
 0x589   :  { %v1831_v24 = vpop.eup %1830 }
 0x58a   :  { %v1833_v26 = vpop.eup %1832  ;;  %v543_v28 = vmul.f32 %v1831_v24, %v2211_v15 }
 0x58b   :  { %v544_v30 = vmul.f32 %v1833_v26, %v2230_v36 }
 0x58c   :  { %v545_v32 = vadd.f32 %v543_v28, %v2215_v19 }
 0x58d   :  { %v546_v33 = vadd.f32 %v544_v30, %v2232_v38 }
 0x58e   :  { %549 = vrot.lane.b32.xlu1 %v545_v32, %s2068_s21  ;;  %v547_v43 = vmul.f32 %v545_v32, %v472_v55 }
 0x58f   :  { %566 = vrot.lane.b32.xlu2 %v546_v33, %s2068_s21  ;;  %v564_v39 = vmul.f32 %v546_v33, %v489_v57  ;;  %v249_v57 = vadd.f32 %v2203_v8, %v248_v56 }
 0x5e9   :  { %v567_v34 = vpop.permute.xlu2 %566 }
 0x5ea   :  { %v569_v29 = vmul.f32 %v567_v34, %v546_v33 }
 0x5ec   :  { %571 = vrot.lane.b32.xlu1 %v569_v29, %s2078_s0 }
 0x600   :  { %v550_v35 = vpop.permute.xlu1 %549 }
 0x601   :  { %v552_v37 = vmul.f32 %v550_v35, %v545_v32 }
 0x603   :  { %554 = vrot.lane.b32.xlu0 %v552_v37, %s2078_s0 }
 0x65e   :  { %v572_v40 = vpop.permute.xlu1 %571 }
 0x65f   :  { %v574_v41 = vadd.f32 %v572_v40, %v564_v39 }
 0x661   :  { %1834 = vtanh.f32 %v574_v41 }
 0x667   :  { %v1835_v42 = vpop.eup %1834 }
 0x668   :  { %577 = vrot.lane.b32.xlu0 %v1835_v42, %s2068_s21 }
 0x675   :  { %v555_v44 = vpop.permute.xlu0 %554 }
 0x676   :  { %v557_v45 = vadd.f32 %v555_v44, %v547_v43 }
 0x678   :  { %1836 = vtanh.f32 %v557_v45 }
 0x67e   :  { %v1837_v46 = vpop.eup %1836 }
 0x67f   :  { %560 = vrot.lane.b32.xlu2 %v1837_v46, %s2068_s21 }
 0x6d9   :  { %v561_v48 = vpop.permute.xlu2 %560 }
 0x6da   :  { %v578_v31 = vpop.permute.xlu0 %577  ;;  %v563_v49 = vmul.f32 %v561_v48, %v545_v32 }
 0x6db   :  { %v580_v50 = vmul.f32 %v578_v31, %v546_v33  ;;  %v251_v33 = vpop.f32.mrf.mxu0 }
 0x6dc   :  { %582 = vrot.lane.b32.xlu1 %v563_v49, %s2078_s0  ;;  %v252_v34 = vadd.f32 %v2203_v8, %v251_v33 }
 0x6dd   :  { %587 = vrot.lane.b32.xlu2 %v580_v50, %s2068_s21 }
 0x737   :  { %v588_v52 = vpop.permute.xlu2 %587 }
 0x738   :  { %590 = vst.msk [vmem:[#allocation3 + $0x28] sm:$0xff] %vm378_vm8, %v588_v52 }
 0x74e   :  { %v583_v53 = vpop.permute.xlu1 %582 }
 0x74f   :  { %585 = vst.msk [vmem:[#allocation3 + $0x10] sm:$0xff] %vm372_vm7, %v583_v53  ;;  %v591_v54 = vsel %vm372_vm7, %v583_v53, %v588_v52 }
 0x750   :  { %v592_v55 = vpack.c.bf16 %v591_v54, %v591_v54 }
 0x752   :  { %1688 = vmatmul.msk.bf16.vlgmr.msra.gmra.mxu2 %vm424_vm9, %v592_v55  ;;  %1689 = vmatmul.msk.bf16.vlgmr.msra.gmra.mxu3 %vm424_vm9, %v592_v55 }
 0x753   :  { %857 = vmatpush.bf16.msra.mxu2 %v2258_v60  ;;  %870 = vmatpush.bf16.msra.mxu3 %v2269_v0 }
 0x757   :  { %858 = vmatpush.bf16.msra.mxu2 %v2278_v3  ;;  %871 = vmatpush.bf16.msra.mxu3 %v2282_v4 }
 0x75b   :  { %859 = vmatpush.bf16.msra.mxu2 %v2298_v10  ;;  %872 = vmatpush.bf16.msra.mxu3 %v2302_v11 }
 0x75f   :  { %860 = vmatpush.bf16.msra.mxu2 %v2319_v20  ;;  %873 = vmatpush.bf16.msra.mxu3 %v2324_v22 }
 0x7d5   :  { %v607_v58 = vpop.f32.mrf.mxu2  ;;  %v620_v59 = vpop.f32.mrf.mxu3 }
 0x7d6   :  { %v624_v60 = vadd.f32 %v607_v58, %v249_v57  ;;  %v625_v0 = vadd.f32 %v620_v59, %v2224_v27 }
 0x7d8   :  { %1838 = vtanh.f32 %v624_v60 }
 0x7d9   :  { %1840 = vtanh.f32 %v625_v0 }
 0x7dd   :  { %v609_v3 = vpop.f32.mrf.mxu2  ;;  %v622_v4 = vpop.f32.mrf.mxu3 }
 0x7de   :  { %v1839_v61 = vpop.eup %1838 }
 0x7df   :  { %v1841_v10 = vpop.eup %1840  ;;  %v628_v11 = vmul.f32 %v1839_v61, %v2211_v15 }
 0x7e0   :  { %v629_v20 = vmul.f32 %v1841_v10, %v2230_v36 }
 0x7e1   :  { %v630_v22 = vadd.f32 %v628_v11, %v2215_v19 }
 0x7e2   :  { %v631_v62 = vadd.f32 %v629_v20, %v2232_v38 }
 0x7e3   :  { %634 = vrot.lane.b32.xlu0 %v630_v22, %s2068_s21  ;;  %v632_v51 = vmul.f32 %v630_v22, %v557_v45 }
 0x7e4   :  { %651 = vrot.lane.b32.xlu1 %v631_v62, %s2068_s21  ;;  %v649_v7 = vmul.f32 %v631_v62, %v574_v41 }
 0x855   :  { %v635_v63 = vpop.permute.xlu0 %634 }
 0x856   :  { %v652_v27 = vpop.permute.xlu1 %651  ;;  %v637_v1 = vmul.f32 %v635_v63, %v630_v22 }
 0x857   :  { %v654_v47 = vmul.f32 %v652_v27, %v631_v62 }
 0x858   :  { %639 = vrot.lane.b32.xlu2 %v637_v1, %s2078_s0 }
 0x859   :  { %656 = vrot.lane.b32.xlu0 %v654_v47, %s2078_s0 }
 0x8b2   :  { %v640_v2 = vpop.permute.xlu2 %639 }
 0x8b3   :  { %v642_v5 = vadd.f32 %v640_v2, %v632_v51 }
 0x8b5   :  { %1842 = vtanh.f32 %v642_v5 }
 0x8bb   :  { %v1843_v6 = vpop.eup %1842 }
 0x8bc   :  { %645 = vrot.lane.b32.xlu1 %v1843_v6, %s2068_s21 }
 0x8cb   :  { %v657_v9 = vpop.permute.xlu0 %656 }
 0x8cc   :  { %v659_v12 = vadd.f32 %v657_v9, %v649_v7 }
 0x8ce   :  { %1844 = vtanh.f32 %v659_v12 }
 0x8d4   :  { %v1845_v14 = vpop.eup %1844 }
 0x8d5   :  { %662 = vrot.lane.b32.xlu2 %v1845_v14, %s2068_s21 }
 0x92e   :  { %v646_v16 = vpop.permute.xlu1 %645 }
 0x92f   :  { %v663_v17 = vpop.permute.xlu2 %662  ;;  %v648_v21 = vmul.f32 %v646_v16, %v630_v22  ;;  %v253_v22 = vpop.f32.mrf.mxu0 }
 0x930   :  { %v665_v24 = vmul.f32 %v663_v17, %v631_v62  ;;  %v254_v27 = vadd.f32 %v2203_v8, %v253_v22 }
 0x931   :  { %667 = vrot.lane.b32.xlu0 %v648_v21, %s2078_s0 }
 0x932   :  { %672 = vrot.lane.b32.xlu1 %v665_v24, %s2068_s21 }
 0x937   :  { %v256_v62 = vpop.f32.mrf.mxu0 }
 0x93f   :  { %v2452_v63 = vpop.f32.mrf.mxu0 }
 0x9a3   :  { %v668_v26 = vpop.permute.xlu0 %667 }
 0x9a4   :  { %670 = vst.msk [vmem:[#allocation3 + $0x18] sm:$0xff] %vm372_vm7, %v668_v26  ;;  %v673_v28 = vpop.permute.xlu1 %672 }
 0x9a5   :  { %675 = vst.msk [vmem:[#allocation3 + $0x20] sm:$0xff] %vm378_vm8, %v673_v28  ;;  %v676_v30 = vsel %vm372_vm7, %v668_v26, %v673_v28 }
 0x9a6   :  { %v677_v32 = vpack.c.bf16 %v676_v30, %v676_v30 }
 0x9a8   :  { %1690 = vmatmul.msk.bf16.vlgmr.msrb.gmra.mxu2 %vm424_vm9, %v677_v32  ;;  %1691 = vmatmul.msk.bf16.vlgmr.msrb.gmra.mxu3 %vm424_vm9, %v677_v32 }
 0xa2b   :  { %v692_v29 = vpop.f32.mrf.mxu2  ;;  %v705_v35 = vpop.f32.mrf.mxu3 }
 0xa2c   :  { %v709_v37 = vadd.f32 %v692_v29, %v252_v34  ;;  %v710_v39 = vadd.f32 %v705_v35, %v2222_v25 }
 0xa2e   :  { %1846 = vtanh.f32 %v709_v37 }
 0xa2f   :  { %1848 = vtanh.f32 %v710_v39 }
 0xa33   :  { %v694_v40 = vpop.f32.mrf.mxu2  ;;  %v707_v41 = vpop.f32.mrf.mxu3 }
 0xa34   :  { %v1847_v42 = vpop.eup %1846 }
 0xa35   :  { %v1849_v43 = vpop.eup %1848  ;;  %v713_v44 = vmul.f32 %v1847_v42, %v2211_v15 }
 0xa36   :  { %v714_v45 = vmul.f32 %v1849_v43, %v2230_v36 }
 0xa37   :  { %v715_v46 = vadd.f32 %v713_v44, %v2215_v19 }
 0xa38   :  { %v716_v48 = vadd.f32 %v714_v45, %v2232_v38 }
 0xa39   :  { %719 = vrot.lane.b32.xlu2 %v715_v46, %s2068_s21  ;;  %v717_v52 = vmul.f32 %v715_v46, %v642_v5 }
 0xa3a   :  { %736 = vrot.lane.b32.xlu0 %v716_v48, %s2068_s21  ;;  %v734_v54 = vmul.f32 %v716_v48, %v659_v12 }
 0xa93   :  { %v720_v31 = vpop.permute.xlu2 %719 }
 0xa94   :  { %v722_v25 = vmul.f32 %v720_v31, %v715_v46 }
 0xa96   :  { %724 = vrot.lane.b32.xlu1 %v722_v25, %s2078_s0 }
 0xaac   :  { %v737_v49 = vpop.permute.xlu0 %736 }
 0xaad   :  { %v739_v50 = vmul.f32 %v737_v49, %v716_v48 }
 0xaaf   :  { %741 = vrot.lane.b32.xlu2 %v739_v50, %s2078_s0 }
 0xb08   :  { %v725_v53 = vpop.permute.xlu1 %724 }
 0xb09   :  { %v727_v55 = vadd.f32 %v725_v53, %v717_v52  ;;  %v742_v56 = vpop.permute.xlu2 %741 }
 0xb0a   :  { %v744_v57 = vadd.f32 %v742_v56, %v734_v54 }
 0xb0b   :  { %1850 = vtanh.f32 %v727_v55 }
 0xb0c   :  { %1852 = vtanh.f32 %v744_v57 }
 0xb11   :  { %v1851_v58 = vpop.eup %1850 }
 0xb12   :  { %v1853_v59 = vpop.eup %1852  ;;  %730 = vrot.lane.b32.xlu0 %v1851_v58, %s2068_s21 }
 0xb13   :  { %747 = vrot.lane.b32.xlu1 %v1853_v59, %s2068_s21 }
 0xb84   :  { %v731_v60 = vpop.permute.xlu0 %730 }
 0xb85   :  { %v748_v0 = vpop.permute.xlu1 %747  ;;  %v733_v3 = vmul.f32 %v731_v60, %v715_v46 }
 0xb86   :  { %v750_v4 = vmul.f32 %v748_v0, %v716_v48  ;;  %v257_v48 = vadd.f32 %v2203_v8, %v256_v62 }
 0xb87   :  { %752 = vrot.lane.b32.xlu2 %v733_v3, %s2078_s0 }
 0xb88   :  { %757 = vrot.lane.b32.xlu0 %v750_v4, %s2068_s21 }
 0xbe1   :  { %v753_v61 = vpop.permute.xlu2 %752 }
 0xbe2   :  { %755 = vst.msk [vmem:[#allocation3 + $0x20] sm:$0xff] %vm372_vm7, %v753_v61 }
 0xbfa   :  { %v758_v10 = vpop.permute.xlu0 %757 }
 0xbfb   :  { %760 = vst.msk [vmem:[#allocation3 + $0x18] sm:$0xff] %vm378_vm8, %v758_v10  ;;  %v761_v11 = vsel %vm372_vm7, %v753_v61, %v758_v10 }
 0xbfc   :  { %v762_v20 = vpack.c.bf16 %v761_v11, %v761_v11 }
 0xbfe   :  { %1692 = vmatmul.msk.bf16.vlgmr.msrb.gmra.mxu0 %vm424_vm9, %v762_v20  ;;  %1693 = vmatmul.msk.bf16.vlgmr.msrb.gmra.mxu1 %vm424_vm9, %v762_v20 }
 0xc7b   :  { %v777_v1 = vpop.f32.mrf.mxu0  ;;  %v790_v47 = vpop.f32.mrf.mxu1 }
 0xc7c   :  { %v794_v51 = vadd.f32 %v777_v1, %v254_v27  ;;  %v795_v2 = vadd.f32 %v790_v47, %v2220_v23 }
 0xc7e   :  { %1854 = vtanh.f32 %v794_v51 }
 0xc7f   :  { %1856 = vtanh.f32 %v795_v2 }
 0xc83   :  { %v779_v5 = vpop.f32.mrf.mxu0  ;;  %v792_v6 = vpop.f32.mrf.mxu1 }
 0xc84   :  { %v1855_v7 = vpop.eup %1854 }
 0xc85   :  { %v1857_v9 = vpop.eup %1856  ;;  %v798_v12 = vmul.f32 %v1855_v7, %v2211_v15 }
 0xc86   :  { %v799_v14 = vmul.f32 %v1857_v9, %v2230_v36 }
 0xc87   :  { %v800_v16 = vadd.f32 %v798_v12, %v2215_v19 }
 0xc88   :  { %v801_v17 = vadd.f32 %v799_v14, %v2232_v38 }
 0xc89   :  { %804 = vrot.lane.b32.xlu1 %v800_v16, %s2068_s21  ;;  %v802_v34 = vmul.f32 %v800_v16, %v727_v55 }
 0xc8a   :  { %821 = vrot.lane.b32.xlu2 %v801_v17, %s2068_s21  ;;  %v819_v28 = vmul.f32 %v801_v17, %v744_v57 }
 0xce4   :  { %v822_v21 = vpop.permute.xlu2 %821 }
 0xce5   :  { %v824_v23 = vmul.f32 %v822_v21, %v801_v17 }
 0xce7   :  { %826 = vrot.lane.b32.xlu1 %v824_v23, %s2078_s0 }
 0xcfb   :  { %v805_v24 = vpop.permute.xlu1 %804 }
 0xcfc   :  { %v807_v26 = vmul.f32 %v805_v24, %v800_v16 }
 0xcfe   :  { %809 = vrot.lane.b32.xlu0 %v807_v26, %s2078_s0 }
 0xd59   :  { %v827_v30 = vpop.permute.xlu1 %826 }
 0xd5a   :  { %v829_v32 = vadd.f32 %v827_v30, %v819_v28 }
 0xd5c   :  { %1858 = vtanh.f32 %v829_v32 }
 0xd62   :  { %v1859_v33 = vpop.eup %1858 }
 0xd63   :  { %832 = vrot.lane.b32.xlu0 %v1859_v33, %s2068_s21 }
 0xd70   :  { %v810_v29 = vpop.permute.xlu0 %809 }
 0xd71   :  { %v812_v35 = vadd.f32 %v810_v29, %v802_v34 }
 0xd73   :  { %1860 = vtanh.f32 %v812_v35 }
 0xd79   :  { %v1861_v37 = vpop.eup %1860 }
 0xd7a   :  { %815 = vrot.lane.b32.xlu2 %v1861_v37, %s2068_s21  ;;  %v1786_v37 = vld [vmem:[#allocation8] sm:$0xff] }
 0xdd4   :  { %v816_v39 = vpop.permute.xlu2 %815 }
 0xdd5   :  { %v833_v40 = vpop.permute.xlu0 %832  ;;  %v818_v41 = vmul.f32 %v816_v39, %v800_v16 }
 0xdd6   :  { %v835_v42 = vmul.f32 %v833_v40, %v801_v17 }
 0xdd7   :  { %837 = vrot.lane.b32.xlu1 %v818_v41, %s2078_s0 }
 0xdd8   :  { %842 = vrot.lane.b32.xlu2 %v835_v42, %s2068_s21 }
 0xe32   :  { %v843_v43 = vpop.permute.xlu2 %842 }
 0xe33   :  { %845 = vst.msk [vmem:[#allocation3 + $0x10] sm:$0xff] %vm378_vm8, %v843_v43 }
 0xe49   :  { %v838_v44 = vpop.permute.xlu1 %837 }
 0xe4a   :  { %840 = vst.msk [vmem:[#allocation3 + $0x28] sm:$0xff] %vm372_vm7, %v838_v44  ;;  %v846_v45 = vsel %vm372_vm7, %v838_v44, %v843_v43 }
 0xe4b   :  { %v847_v46 = vpack.c.bf16 %v846_v45, %v846_v45 }
 0xe4d   :  { %1694 = vmatmul.msk.bf16.vlgmr.msra.gmra.mxu2 %vm424_vm9, %v847_v46  ;;  %1695 = vmatmul.msk.bf16.vlgmr.msra.gmra.mxu3 %vm424_vm9, %v847_v46 }
 0xed0   :  { %v862_v31 = vpop.f32.mrf.mxu2  ;;  %v875_v25 = vpop.f32.mrf.mxu3 }
 0xed1   :  { %v879_v49 = vadd.f32 %v862_v31, %v257_v48  ;;  %v880_v50 = vadd.f32 %v875_v25, %v2213_v18  ;;  %v1018_v48 = vld [vmem:[#allocation3 + $0x10] sm:$0xff]  ;;  %v1019_v31 = vld [vmem:[#allocation3 + $0x18] sm:$0xff] }
 0xed2   :  { %v1026_v25 = vpack.c.bf16 %v1018_v48, %v1018_v48 }
 0xed3   :  { %1862 = vtanh.f32 %v879_v49  ;;  %v1027_v49 = vpack.c.bf16 %v1019_v31, %v1019_v31 }
 0xed4   :  { %1864 = vtanh.f32 %v880_v50  ;;  %v1120_v50 = vunpack.c.l.b16 %v1026_v25 }
 0xed8   :  { %v864_v52 = vpop.f32.mrf.mxu2  ;;  %v877_v53 = vpop.f32.mrf.mxu3 }
 0xed9   :  { %v1863_v54 = vpop.eup %1862  ;;  %v1121_v52 = vunpack.c.l.b16 %v1027_v49 }
 0xeda   :  { %v1865_v55 = vpop.eup %1864  ;;  %v883_v56 = vmul.f32 %v1863_v54, %v2211_v15  ;;  %v1021_v54 = vld [vmem:[#allocation3 + $0x28] sm:$0xff] }
 0xedb   :  { %v884_v57 = vmul.f32 %v1865_v55, %v2230_v36  ;;  %v1127_v53 = vpack.c.b16 %v1121_v52, %v1120_v50  ;;  %v1020_v55 = vld [vmem:[#allocation3 + $0x20] sm:$0xff] }
 0xedc   :  { %v885_v58 = vadd.f32 %v883_v56, %v2215_v19  ;;  %v1029_v56 = vpack.c.bf16 %v1021_v54, %v1021_v54 }
 0xedd   :  { %v886_v59 = vadd.f32 %v884_v57, %v2232_v38  ;;  %v1028_v57 = vpack.c.bf16 %v1020_v55, %v1020_v55 }
 0xede   :  { %889 = vrot.lane.b32.xlu0 %v885_v58, %s2068_s21  ;;  %v887_v3 = vmul.f32 %v885_v58, %v812_v35 }
 0xedf   :  { %906 = vrot.lane.b32.xlu1 %v886_v59, %s2068_s21  ;;  %v904_v11 = vmul.f32 %v886_v59, %v829_v32 }
 0xf50   :  { %v890_v8 = vpop.permute.xlu0 %889 }
 0xf51   :  { %v907_v18 = vpop.permute.xlu1 %906  ;;  %v892_v60 = vmul.f32 %v890_v8, %v885_v58 }
 0xf52   :  { %v909_v0 = vmul.f32 %v907_v18, %v886_v59  ;;  %v2511_v18 = vld [vmem:[%s2640_s7] ss:$0 sm:$0xff] }
 0xf53   :  { %894 = vrot.lane.b32.xlu2 %v892_v60, %s2078_s0 }
 0xf54   :  { %911 = vrot.lane.b32.xlu0 %v909_v0, %s2078_s0 }
 0xfad   :  { %v895_v4 = vpop.permute.xlu2 %894 }
 0xfae   :  { %v2483_v61 = vadd.f32 %v895_v4, %v887_v3 }
 0xfb0   :  { %1866 = vtanh.f32 %v2483_v61 }
 0xfb6   :  { %v1867_v10 = vpop.eup %1866 }
 0xfb7   :  { %900 = vrot.lane.b32.xlu1 %v1867_v10, %s2068_s21 }
 0xfc6   :  { %v912_v20 = vpop.permute.xlu0 %911 }
 0xfc7   :  { %v914_v22 = vadd.f32 %v912_v20, %v904_v11 }
 0xfc9   :  { %1868 = vtanh.f32 %v914_v22 }
 0xfcf   :  { %v1869_v62 = vpop.eup %1868 }
 0xfd0   :  { %917 = vrot.lane.b32.xlu2 %v1869_v62, %s2068_s21 }
0x1029   :  { %v901_v27 = vpop.permute.xlu1 %900 }
0x102a   :  { %v918_v1 = vpop.permute.xlu2 %917  ;;  %v903_v47 = vmul.f32 %v901_v27, %v885_v58  ;;  %v1123_v58 = vunpack.c.l.b16 %v1029_v56 }
0x102b   :  { %v920_v51 = vmul.f32 %v918_v1, %v886_v59  ;;  %v1122_v59 = vunpack.c.l.b16 %v1028_v57 }
0x102c   :  { %922 = vrot.lane.b32.xlu0 %v903_v47, %s2078_s0  ;;  %v1741_v47 = vld [vmem:[#allocation11 + $0x10] sm:$0xf] }
0x102d   :  { %927 = vrot.lane.b32.xlu1 %v920_v51, %s2068_s21  ;;  %v1128_v8 = vpack.c.b16 %v1123_v58, %v1122_v59  ;;  %v1791_v51 = vld [vmem:[#allocation11 + $0x14] sm:$0xf0] }
0x109e   :  { %v923_v2 = vpop.permute.xlu0 %922 }
0x109f   :  { %925 = vst.msk [vmem:[#allocation3 + $0x30] sm:$0xff] %vm372_vm7, %v923_v2  ;;  %v928_v5 = vpop.permute.xlu1 %927 }
0x10a0   :  { %930 = vst.msk [vmem:[#allocation3 + $0x8] sm:$0xff] %vm378_vm8, %v928_v5  ;;  %v931_v6 = vsel %vm372_vm7, %v923_v2, %v928_v5  ;;  %v1737_v2 = vld [vmem:[#allocation11] sm:$0xf]  ;;  %v2519_v5 = vor.u32 %v1791_v51, %v1741_v47 }
0x10a1   :  { %v932_v7 = vpack.c.bf16 %v931_v6, %v931_v6  ;;  %v1790_v6 = vld [vmem:[#allocation11 + $0x4] sm:$0xf0] }
0x10a2   :  { %1254 = vmatpush.bf16.msrb.mxu0 %v2519_v5  ;;  %1296 = vmatpush.bf16.msrb.mxu1 %v2519_v5 }
0x10a3   :  { %1696 = vmatmul.msk.bf16.vlgmr.msra.gmra.mxu0 %vm424_vm9, %v932_v7  ;;  %1697 = vmatmul.msk.bf16.vlgmr.msra.gmra.mxu1 %vm424_vm9, %v932_v7  ;;  %v2522_v7 = vor.u32 %v1790_v6, %v1737_v2 }
0x10a6   :  { %1255 = vmatpush.bf16.msrb.mxu0 %v2522_v7  ;;  %1297 = vmatpush.bf16.msrb.mxu1 %v2522_v7  ;;  %v1022_v47 = vld [vmem:[#allocation3 + $0x30] sm:$0xff] }
0x10a7   :  { %v1017_v40 = vld [vmem:[#allocation3 + $0x8] sm:$0xff]  ;;  %v1030_v51 = vpack.c.bf16 %v1022_v47, %v1022_v47 }
0x10a8   :  { %v1025_v41 = vpack.c.bf16 %v1017_v40, %v1017_v40 }
0x10aa   :  { %v1119_v45 = vunpack.c.l.b16 %v1025_v41  ;;  %1380 = vmatpush.bf16.msra.mxu0 %v2519_v5  ;;  %1422 = vmatpush.bf16.msra.mxu1 %v2519_v5 }
0x10ae   :  { %1381 = vmatpush.bf16.msra.mxu0 %v2522_v7  ;;  %1423 = vmatpush.bf16.msra.mxu1 %v2522_v7 }
0x1120   :  { %v2495_v9 = vpop.f32.mrf.mxu0  ;;  %v960_v12 = vpop.f32.mrf.mxu1 }
0x1121   :  { %v965_v14 = vadd.f32 %v960_v12, %v2209_v13  ;;  %v1789_v13 = vld [vmem:[#allocation8 + $0x18] sm:$0xff] }
0x1122   :  { %1170 = vmatpush.bf16.msrb.mxu3 %v1789_v13 }
0x1123   :  { %1870 = vtanh.f32 %v965_v14 }
0x1128   :  { %v949_v16 = vpop.f32.mrf.mxu0  ;;  %v962_v17 = vpop.f32.mrf.mxu1 }
0x1129   :  { %v1871_v21 = vpop.eup %1870 }
0x112a   :  { %v969_v23 = vmul.f32 %v1871_v21, %v2230_v36  ;;  %v1788_v36 = vld [vmem:[#allocation8 + $0x10] sm:$0xff] }
0x112b   :  { %1171 = vmatpush.bf16.msrb.mxu3 %v1788_v36 }
0x112c   :  { %v971_v24 = vadd.f32 %v969_v23, %v2232_v38  ;;  %v1787_v38 = vld [vmem:[#allocation8 + $0x8] sm:$0xff] }
0x112e   :  { %991 = vrot.lane.b32.xlu2 %v971_v24, %s2068_s21  ;;  %v989_v30 = vmul.f32 %v971_v24, %v914_v22 }
0x112f   :  { %1172 = vmatpush.bf16.msrb.mxu3 %v1787_v38 }
0x1133   :  { %1173 = vmatpush.bf16.msrb.mxu3 %v1786_v37 }
0x1188   :  { %v992_v26 = vpop.permute.xlu2 %991 }
0x1189   :  { %v994_v28 = vmul.f32 %v992_v26, %v971_v24 }
0x118b   :  { %996 = vrot.lane.b32.xlu0 %v994_v28, %s2078_s0 }
0x11fd   :  { %v997_v32 = vpop.permute.xlu0 %996 }
0x11fe   :  { %v999_v33 = vadd.f32 %v997_v32, %v989_v30 }
0x1200   :  { %1872 = vtanh.f32 %v999_v33 }
0x1206   :  { %v1873_v34 = vpop.eup %1872 }
0x1207   :  { %1002 = vrot.lane.b32.xlu1 %v1873_v34, %s2068_s21  ;;  %v1914_v34 = vld [vmem:[%s2635_s2] ss:$0 sm:$0xff] }
0x1208   :  { %v259_v13 = vadd.f32 %v1914_v34, %v2452_v63 }
0x1279   :  { %v1003_v29 = vpop.permute.xlu1 %1002 }
0x127a   :  { %v1005_v35 = vmul.f32 %v1003_v29, %v971_v24  ;;  %v964_v29 = vadd.f32 %v2495_v9, %v259_v13 }
0x127c   :  { %1012 = vrot.lane.b32.xlu2 %v1005_v35, %s2068_s21 }
0x12d6   :  { %v1013_v39 = vpop.permute.xlu2 %1012 }
0x12d7   :  { %1015 = vst.msk [vmem:[#allocation3] sm:$0xff] %vm378_vm8, %v1013_v39 }
0x12de   :  { %v1016_v42 = vld [vmem:[#allocation3] sm:$0xff] }
0x12df   :  { %v1024_v43 = vpack.c.bf16 %v1016_v42, %v1016_v42 }
0x12e1   :  { %v1118_v44 = vunpack.c.l.b16 %v1024_v43 }
0x12e3   :  { %v1126_v46 = vpack.c.b16 %v1119_v45, %v1118_v44 }
0x12e5   :  { %1731 = vmatmul.msk.bf16.vlgmr.msrb.gmra.mxu3 %vm424_vm9, %v1126_v46 }
0x12f5   :  { %1732 = vmatmul.msk.bf16.gmra.mxu3 %vm424_vm9, %v1127_v53 }
0x1305   :  { %1733 = vmatmul.msk.bf16.gmra.mxu3 %vm424_vm9, %v1128_v8 }
0x1368   :  { %v1175_v60 = vpop.f32.mrf.mxu3 }
0x1369   :  { %v1176_v0 = vadd.f32 %v2511_v18, %v1175_v60 }
0x136b   :  { %1874 = vtanh.f32 %v1176_v0 }
0x1370   :  { %v1177_v21 = vpop.f32.mrf.mxu3 }
0x1371   :  { %v1875_v3 = vpop.eup %1874  ;;  %v1178_v23 = vadd.f32 %v2511_v18, %v1177_v21 }
0x1372   :  { %v1209_v4 = vmul.f32 %v1875_v3, %v2211_v15 }
0x1374   :  { %v1210_v10 = vadd.f32 %v1209_v4, %v2215_v19  ;;  %v1784_v4 = vld [vmem:[#allocation9 + $0x10] sm:$0xff] }
0x1376   :  { %1213 = vrot.lane.b32.xlu0 %v1210_v10, %s2068_s21  ;;  %v1211_v22 = vmul.f32 0.0, %v1210_v10 }
0x1378   :  { %v1180_v31 = vpop.f32.mrf.mxu3 }
0x1379   :  { %v1181_v25 = vadd.f32 %v2511_v18, %v1180_v31 }
0x13e8   :  { %v1214_v11 = vpop.permute.xlu0 %1213 }
0x13e9   :  { %v1216_v20 = vmul.f32 %v1214_v11, %v1210_v10  ;;  %v1782_v11 = vld [vmem:[#allocation9] sm:$0xff] }
0x13eb   :  { %1218 = vrot.lane.b32.xlu1 %v1216_v20, %s2078_s0 }
0x145d   :  { %v1219_v62 = vpop.permute.xlu1 %1218 }
0x145e   :  { %v1221_v27 = vadd.f32 %v1219_v62, %v1211_v22 }
0x1460   :  { %1876 = vtanh.f32 %v1221_v27 }
0x1466   :  { %v1877_v1 = vpop.eup %1876 }
0x1467   :  { %1224 = vrot.lane.b32.xlu2 %v1877_v1, %s2068_s21 }
0x14c1   :  { %v1225_v12 = vpop.permute.xlu2 %1224 }
0x14c2   :  { %v1227_v14 = vmul.f32 %v1225_v12, %v1210_v10  ;;  %v1783_v10 = vld [vmem:[#allocation9 + $0x8] sm:$0xff]  ;;  %v1124_v12 = vunpack.c.l.b16 %v1030_v51 }
0x14c4   :  { %v1229_v16 = vpack.c.bf16 %v1227_v14, %v1227_v14 }
0x14c6   :  { %1231 = vrot.lane.b32.xlu0 %v1229_v16, %s2078_s0 }
0x1538   :  { %v1232_v17 = vpop.permute.xlu0 %1231 }
0x1539   :  { %1743 = vmatmul.msk.bf16.vlgmr.msrb.gmra.mxu0 %vm372_vm7, %v1232_v17 }
0x153a   :  { %1506 = vmatpush.bf16.msrb.mxu0 %v2519_v5 }
0x153e   :  { %1507 = vmatpush.bf16.msrb.mxu0 %v2522_v7 }
0x15b6   :  { %v1257_v24 = vpop.f32.mrf.mxu0 }
0x15b7   :  { %v1261_v26 = vadd.f32 %v1257_v24, %v1178_v23 }
0x15b9   :  { %1878 = vtanh.f32 %v1261_v26 }
0x15ba   :  { %1880 = vtanh.f32 %v964_v29 }
0x15be   :  { %v1259_v28 = vpop.f32.mrf.mxu0 }
0x15bf   :  { %v1879_v30 = vpop.eup %1878 }
0x15c0   :  { %v1263_v32 = vmul.f32 %v1879_v30, %v2211_v15  ;;  %v1881_v38 = vpop.eup %1880  ;;  %v1182_v30 = vpop.f32.mrf.mxu3 }
0x15c1   :  { %v968_v37 = vmul.f32 %v1881_v38, %v2211_v15 }
0x15c2   :  { %v1264_v33 = vadd.f32 %v1263_v32, %v2215_v19  ;;  %v1183_v32 = vadd.f32 %v2511_v18, %v1182_v30 }
0x15c3   :  { %v970_v39 = vadd.f32 %v968_v37, %v2215_v19 }
0x15c4   :  { %1267 = vrot.lane.b32.xlu1 %v1264_v33, %s2068_s21  ;;  %v1265_v40 = vmul.f32 %v1264_v33, %v1221_v27 }
0x15c5   :  { %v972_v55 = vmul.f32 %v970_v39, %v2483_v61  ;;  %v1785_v61 = vld [vmem:[#allocation9 + $0x18] sm:$0xff] }
0x15c6   :  { %1075 = vmatpush.bf16.msrb.mxu2 %v1785_v61 }
0x15ca   :  { %1076 = vmatpush.bf16.msrb.mxu2 %v1784_v4 }
0x15ce   :  { %1077 = vmatpush.bf16.msrb.mxu2 %v1783_v10 }
0x15d2   :  { %1078 = vmatpush.bf16.msrb.mxu2 %v1782_v11 }
0x15d6   :  { %1338 = vmatpush.bf16.msra.mxu2 %v2519_v5 }
0x15da   :  { %1339 = vmatpush.bf16.msra.mxu2 %v2522_v7 }
0x1636   :  { %v1268_v35 = vpop.permute.xlu1 %1267 }
0x1637   :  { %v1270_v36 = vmul.f32 %v1268_v35, %v1264_v33 }
0x1639   :  { %1272 = vrot.lane.b32.xlu2 %v1270_v36, %s2078_s0 }
0x1641   :  { %974 = vrot.lane.b32.xlu2 %v970_v39, %s2068_s21 }
0x1693   :  { %v1273_v41 = vpop.permute.xlu2 %1272 }
0x1694   :  { %v1275_v42 = vadd.f32 %v1273_v41, %v1265_v40 }
0x1696   :  { %1882 = vtanh.f32 %v1275_v42 }
0x169b   :  { %v975_v45 = vpop.permute.xlu2 %974 }
0x169c   :  { %v1883_v43 = vpop.eup %1882  ;;  %v977_v46 = vmul.f32 %v975_v45, %v970_v39 }
0x169d   :  { %1278 = vrot.lane.b32.xlu0 %v1883_v43, %s2068_s21 }
0x170f   :  { %v1279_v63 = vpop.permute.xlu0 %1278 }
0x1710   :  { %v1281_v9 = vmul.f32 %v1279_v63, %v1264_v33 }
0x1712   :  { %v1283_v44 = vpack.c.bf16 %v1281_v9, %v1281_v9  ;;  %v1185_v9 = vpop.f32.mrf.mxu3 }
0x1714   :  { %1285 = vrot.lane.b32.xlu1 %v1283_v44, %s2078_s0  ;;  %v1186_v44 = vadd.f32 %v2511_v18, %v1185_v9 }
0x171c   :  { %979 = vrot.lane.b32.xlu1 %v977_v46, %s2078_s0 }
0x1786   :  { %v1286_v48 = vpop.permute.xlu1 %1285 }
0x1787   :  { %1744 = vmatmul.msk.bf16.vlgmr.msrb.gmra.mxu1 %vm372_vm7, %v1286_v48 }
0x178e   :  { %v980_v52 = vpop.permute.xlu1 %979 }
0x178f   :  { %v982_v57 = vadd.f32 %v980_v52, %v972_v55 }
0x1804   :  { %v1299_v49 = vpop.f32.mrf.mxu1 }
0x1805   :  { %v1303_v50 = vadd.f32 %v1299_v49, %v1181_v25 }
0x1807   :  { %1884 = vtanh.f32 %v1303_v50 }
0x1808   :  { %1886 = vtanh.f32 %v982_v57 }
0x180c   :  { %v1301_v53 = vpop.f32.mrf.mxu1 }
0x180d   :  { %v1885_v54 = vpop.eup %1884 }
0x180e   :  { %v1305_v56 = vmul.f32 %v1885_v54, %v2211_v15  ;;  %v1887_v59 = vpop.eup %1886 }
0x1810   :  { %v1306_v58 = vadd.f32 %v1305_v56, %v2215_v19 }
0x1812   :  { %1309 = vrot.lane.b32.xlu0 %v1306_v58, %s2068_s21  ;;  %v1307_v20 = vmul.f32 %v1306_v58, %v1275_v42 }
0x181a   :  { %985 = vrot.lane.b32.xlu0 %v1887_v59, %s2068_s21 }
0x1884   :  { %v1310_v8 = vpop.permute.xlu0 %1309 }
0x1885   :  { %v1312_v60 = vmul.f32 %v1310_v8, %v1306_v58 }
0x1887   :  { %1314 = vrot.lane.b32.xlu2 %v1312_v60, %s2078_s0  ;;  %v1187_v60 = vpop.f32.mrf.mxu3 }
0x188c   :  { %v986_v0 = vpop.permute.xlu0 %985 }
0x188d   :  { %v988_v3 = vmul.f32 %v986_v0, %v970_v39  ;;  %v1188_v0 = vadd.f32 %v2511_v18, %v1187_v60  ;;  %v1792_v60 = vld [vmem:[%s2644_s11] sm:$0xff] }
0x188f   :  { %1007 = vrot.lane.b32.xlu2 %v988_v3, %s2078_s0 }
0x18e1   :  { %v1315_v22 = vpop.permute.xlu2 %1314 }
0x18e2   :  { %v1317_v62 = vadd.f32 %v1315_v22, %v1307_v20 }
0x18e4   :  { %1888 = vtanh.f32 %v1317_v62 }
0x18e9   :  { %v1008_v27 = vpop.permute.xlu2 %1007 }
0x18ea   :  { %v1889_v1 = vpop.eup %1888  ;;  %1010 = vst.msk [vmem:[#allocation3 + $0x38] sm:$0xff] %vm372_vm7, %v1008_v27 }
0x18eb   :  { %1320 = vrot.lane.b32.xlu1 %v1889_v1, %s2068_s21 }
0x18f1   :  { %v1023_v2 = vld [vmem:[#allocation3 + $0x38] sm:$0xff] }
0x18f2   :  { %v1031_v6 = vpack.c.bf16 %v1023_v2, %v1023_v2 }
0x18f4   :  { %1714 = vmatmul.msk.bf16.vlgmr.msrb.gmra.mxu2 %vm424_vm9, %v1031_v6  ;;  %v1125_v14 = vunpack.c.l.b16 %v1031_v6 }
0x18f5   :  { %1464 = vmatpush.bf16.msrb.mxu2 %v2519_v5 }
0x18f6   :  { %v1129_v16 = vpack.c.b16 %v1125_v14, %v1124_v12 }
0x18f8   :  { %1734 = vmatmul.msk.bf16.gmra.mxu3 %vm424_vm9, %v1129_v16 }
0x18f9   :  { %1465 = vmatpush.bf16.msrb.mxu2 %v2522_v7 }
0x195d   :  { %v1321_v17 = vpop.permute.xlu1 %1320 }
0x195e   :  { %v1323_v21 = vmul.f32 %v1321_v17, %v1306_v58 }
0x1960   :  { %v1325_v23 = vpack.c.bf16 %v1323_v21, %v1323_v21 }
0x1962   :  { %1327 = vrot.lane.b32.xlu0 %v1325_v23, %s2078_s0 }
0x1977   :  { %v2569_v24 = vpop.f32.mrf.mxu2 }
0x197b   :  { %v1190_v16 = vpop.f32.mrf.mxu3 }
0x197c   :  { %v1191_v17 = vadd.f32 %v2511_v18, %v1190_v16 }
0x197f   :  { %v1082_v26 = vpop.f32.mrf.mxu2 }
0x19d4   :  { %v1328_v28 = vpop.permute.xlu0 %1327 }
0x19d5   :  { %1745 = vmatmul.msk.bf16.vlgmr.msra.gmra.mxu2 %vm372_vm7, %v1328_v28 }
0x1a58   :  { %v1341_v5 = vpop.f32.mrf.mxu2 }
0x1a59   :  { %v1345_v33 = vadd.f32 %v1341_v5, %v1183_v32 }
0x1a5b   :  { %1890 = vtanh.f32 %v1345_v33 }
0x1a60   :  { %v1343_v34 = vpop.f32.mrf.mxu2 }
0x1a61   :  { %v1891_v13 = vpop.eup %1890 }
0x1a62   :  { %v1347_v7 = vmul.f32 %v1891_v13, %v2211_v15 }
0x1a64   :  { %v1348_v29 = vadd.f32 %v1347_v7, %v2215_v19 }
0x1a66   :  { %1351 = vrot.lane.b32.xlu1 %v1348_v29, %s2068_s21  ;;  %v1349_v38 = vmul.f32 %v1348_v29, %v1317_v62 }
0x1ad8   :  { %v1352_v35 = vpop.permute.xlu1 %1351 }
0x1ad9   :  { %v1354_v36 = vmul.f32 %v1352_v35, %v1348_v29  ;;  %v1812_v35 = vld [vmem:[%s2642_s9] ss:$0 sm:$0xff]  ;;  %s2079_s9 = smov 96  }
0x1adb   :  { %1356 = vrot.lane.b32.xlu2 %v1354_v36, %s2078_s0  ;;  %v1081_v36 = vadd.f32 %v1812_v35, %v2569_v24 }
0x1b35   :  { %v1357_v37 = vpop.permute.xlu2 %1356 }
0x1b36   :  { %v1359_v39 = vadd.f32 %v1357_v37, %v1349_v38 }
0x1b38   :  { %1892 = vtanh.f32 %v1359_v39 }
0x1b3e   :  { %v1893_v40 = vpop.eup %1892 }
0x1b3f   :  { %1362 = vrot.lane.b32.xlu0 %v1893_v40, %s2068_s21 }
0x1bb1   :  { %v1363_v41 = vpop.permute.xlu0 %1362 }
0x1bb2   :  { %v1365_v42 = vmul.f32 %v1363_v41, %v1348_v29 }
0x1bb4   :  { %v1367_v43 = vpack.c.bf16 %v1365_v42, %v1365_v42 }
0x1bb6   :  { %1369 = vrot.lane.b32.xlu1 %v1367_v43, %s2078_s0 }
0x1c28   :  { %v1370_v63 = vpop.permute.xlu1 %1369 }
0x1c29   :  { %1746 = vmatmul.msk.bf16.vlgmr.msra.gmra.mxu0 %vm372_vm7, %v1370_v63  ;;  %v1192_v63 = vpop.f32.mrf.mxu3 }
0x1c2a   :  { %v1193_v9 = vadd.f32 %v2511_v18, %v1192_v63 }
0x1ca6   :  { %v1383_v45 = vpop.f32.mrf.mxu0 }
0x1ca7   :  { %v1387_v46 = vadd.f32 %v1383_v45, %v1186_v44 }
0x1ca9   :  { %1894 = vtanh.f32 %v1387_v46 }
0x1cae   :  { %v1385_v48 = vpop.f32.mrf.mxu0 }
0x1caf   :  { %v1895_v31 = vpop.eup %1894 }
0x1cb0   :  { %v1389_v25 = vmul.f32 %v1895_v31, %v2211_v15 }
0x1cb2   :  { %v1390_v49 = vadd.f32 %v1389_v25, %v2215_v19 }
0x1cb4   :  { %1393 = vrot.lane.b32.xlu2 %v1390_v49, %s2068_s21  ;;  %v1391_v53 = vmul.f32 %v1390_v49, %v1359_v39 }
0x1d0e   :  { %v1394_v50 = vpop.permute.xlu2 %1393 }
0x1d0f   :  { %v1396_v52 = vmul.f32 %v1394_v50, %v1390_v49 }
0x1d11   :  { %1398 = vrot.lane.b32.xlu0 %v1396_v52, %s2078_s0 }
0x1d83   :  { %v1399_v54 = vpop.permute.xlu0 %1398 }
0x1d84   :  { %v1401_v55 = vadd.f32 %v1399_v54, %v1391_v53 }
0x1d86   :  { %1896 = vtanh.f32 %v1401_v55 }
0x1d8c   :  { %v1897_v56 = vpop.eup %1896 }
0x1d8d   :  { %1404 = vrot.lane.b32.xlu1 %v1897_v56, %s2068_s21 }
0x1dff   :  { %v1405_v57 = vpop.permute.xlu1 %1404 }
0x1e00   :  { %v1407_v58 = vmul.f32 %v1405_v57, %v1390_v49 }
0x1e02   :  { %v1409_v59 = vpack.c.bf16 %v1407_v58, %v1407_v58  ;;  %v1795_v58 = vld [vmem:[#allocation12 + $0x8] sm:$0xff] }
0x1e03   :  { %1568 = vmatpush.bf16.msrb.mxu1 %v1795_v58 }
0x1e04   :  { %1411 = vrot.lane.b32.xlu2 %v1409_v59, %s2078_s0  ;;  %v1794_v59 = vld [vmem:[#allocation12] sm:$0xff] }
0x1e07   :  { %1569 = vmatpush.bf16.msrb.mxu1 %v1794_v59 }
0x1e5e   :  { %v1412_v8 = vpop.permute.xlu2 %1411 }
0x1e5f   :  { %1747 = vmatmul.msk.bf16.vlgmr.msra.gmra.mxu1 %vm372_vm7, %v1412_v8  ;;  %v1793_v8 = vld [vmem:[%s2644_s11 + $0x8] sm:$0xff] }
0x1e60   :  { %1599 = vmatpush.bf16.msra.mxu2 %v1793_v8 }
0x1e64   :  { %1600 = vmatpush.bf16.msra.mxu2 %v1792_v60 }
0x1edc   :  { %v1425_v3 = vpop.f32.mrf.mxu1 }
0x1edd   :  { %v1429_v61 = vadd.f32 %v1425_v3, %v1188_v0 }
0x1edf   :  { %1898 = vtanh.f32 %v1429_v61 }
0x1ee4   :  { %v1427_v4 = vpop.f32.mrf.mxu1 }
0x1ee5   :  { %v1899_v10 = vpop.eup %1898 }
0x1ee6   :  { %v1431_v11 = vmul.f32 %v1899_v10, %v2211_v15 }
0x1ee8   :  { %v1432_v20 = vadd.f32 %v1431_v11, %v2215_v19 }
0x1eea   :  { %1435 = vrot.lane.b32.xlu0 %v1432_v20, %s2068_s21  ;;  %v1433_v27 = vmul.f32 %v1432_v20, %v1401_v55 }
0x1f5c   :  { %v1436_v22 = vpop.permute.xlu0 %1435 }
0x1f5d   :  { %v1438_v62 = vmul.f32 %v1436_v22, %v1432_v20  ;;  %v1813_v22 = vld [vmem:[%s2646_s13] ss:$0 sm:$0xff] }
0x1f5f   :  { %1440 = vrot.lane.b32.xlu1 %v1438_v62, %s2078_s0 }
0x1fd1   :  { %v1441_v1 = vpop.permute.xlu1 %1440 }
0x1fd2   :  { %v1443_v47 = vadd.f32 %v1441_v1, %v1433_v27 }
0x1fd4   :  { %1900 = vtanh.f32 %v1443_v47 }
0x1fda   :  { %v1901_v51 = vpop.eup %1900 }
0x1fdb   :  { %1446 = vrot.lane.b32.xlu2 %v1901_v51, %s2068_s21 }
0x2035   :  { %v1447_v2 = vpop.permute.xlu2 %1446 }
0x2036   :  { %v1449_v6 = vmul.f32 %v1447_v2, %v1432_v20 }
0x2038   :  { %v1451_v12 = vpack.c.bf16 %v1449_v6, %v1449_v6 }
0x203a   :  { %1453 = vrot.lane.b32.xlu0 %v1451_v12, %s2078_s0 }
0x20ac   :  { %v1454_v14 = vpop.permute.xlu0 %1453 }
0x20ad   :  { %1748 = vmatmul.msk.bf16.vlgmr.msrb.gmra.mxu2 %vm372_vm7, %v1454_v14 }
0x2130   :  { %v1467_v21 = vpop.f32.mrf.mxu2 }
0x2131   :  { %v1471_v23 = vadd.f32 %v1467_v21, %v1191_v17 }
0x2133   :  { %1902 = vtanh.f32 %v1471_v23 }
0x2138   :  { %v1469_v26 = vpop.f32.mrf.mxu2 }
0x2139   :  { %v1903_v28 = vpop.eup %1902 }
0x213a   :  { %v1473_v30 = vmul.f32 %v1903_v28, %v2211_v15 }
0x213c   :  { %v1474_v32 = vadd.f32 %v1473_v30, %v2215_v19 }
0x213e   :  { %1477 = vrot.lane.b32.xlu1 %v1474_v32, %s2068_s21  ;;  %v1475_v34 = vmul.f32 %v1474_v32, %v1443_v47 }
0x21b0   :  { %v1478_v5 = vpop.permute.xlu1 %1477 }
0x21b1   :  { %v1480_v33 = vmul.f32 %v1478_v5, %v1474_v32 }
0x21b3   :  { %1482 = vrot.lane.b32.xlu2 %v1480_v33, %s2078_s0 }
0x220d   :  { %v1483_v13 = vpop.permute.xlu2 %1482 }
0x220e   :  { %v1485_v7 = vadd.f32 %v1483_v13, %v1475_v34 }
0x2210   :  { %1904 = vtanh.f32 %v1485_v7 }
0x2211   :  { %1906 = vtanh.f32 %v1081_v36 }
0x2216   :  { %v1905_v29 = vpop.eup %1904 }
0x2217   :  { %1488 = vrot.lane.b32.xlu0 %v1905_v29, %s2068_s21  ;;  %v1907_v40 = vpop.eup %1906 }
0x2218   :  { %v1085_v41 = vmul.f32 %v1907_v40, %v2211_v15 }
0x221a   :  { %v1086_v42 = vadd.f32 %v1085_v41, %v2215_v19 }
0x2289   :  { %v1489_v38 = vpop.permute.xlu0 %1488 }
0x228a   :  { %v1491_v37 = vmul.f32 %v1489_v38, %v1474_v32 }
0x228c   :  { %v1493_v39 = vpack.c.bf16 %v1491_v37, %v1491_v37 }
0x228e   :  { %1495 = vrot.lane.b32.xlu1 %v1493_v39, %s2078_s0 }
0x2296   :  { %1088 = vrot.lane.b32.xlu1 %v1086_v42, %s2068_s21 }
0x2300   :  { %v1496_v43 = vpop.permute.xlu1 %1495 }
0x2301   :  { %1749 = vmatmul.msk.bf16.vlgmr.msrb.gmra.mxu0 %vm372_vm7, %v1496_v43 }
0x2308   :  { %v1089_v25 = vpop.permute.xlu1 %1088 }
0x2309   :  { %v1091_v49 = vmul.f32 %v1089_v25, %v1086_v42 }
0x237e   :  { %v1509_v24 = vpop.f32.mrf.mxu0 }
0x237f   :  { %v1513_v44 = vadd.f32 %v1509_v24, %v1193_v9 }
0x2381   :  { %1908 = vtanh.f32 %v1513_v44 }
0x2382   :  { %1910 = vtanh.f32 %v1091_v49 }
0x2386   :  { %v1511_v45 = vpop.f32.mrf.mxu0 }
0x2387   :  { %v1909_v46 = vpop.eup %1908 }
0x2388   :  { %v1515_v48 = vmul.f32 %v1909_v46, %v2211_v15  ;;  %v1911_v53 = vpop.eup %1910 }
0x238a   :  { %v1516_v31 = vadd.f32 %v1515_v48, %v2215_v19 }
0x238c   :  { %1519 = vrot.lane.b32.xlu2 %v1516_v31, %s2068_s21  ;;  %v1517_v18 = vmul.f32 %v1516_v31, %v1485_v7 }
0x23e6   :  { %v1520_v50 = vpop.permute.xlu2 %1519 }
0x23e7   :  { %v1522_v52 = vmul.f32 %v1520_v50, %v1516_v31 }
0x23e9   :  { %1524 = vrot.lane.b32.xlu0 %v1522_v52, %s2078_s0 }
0x23f1   :  { %1094 = vrot.lane.b32.xlu0 %v1911_v53, %s2079_s9 }
0x245b   :  { %v1525_v54 = vpop.permute.xlu0 %1524 }
0x245c   :  { %v1527_v55 = vadd.f32 %v1525_v54, %v1517_v18 }
0x245e   :  { %1912 = vtanh.f32 %v1527_v55 }
0x2463   :  { %v1095_v15 = vpop.permute.xlu0 %1094 }
0x2464   :  { %v1913_v56 = vpop.eup %1912  ;;  %v1097_v19 = vmul.f32 %v1095_v15, %v1086_v42 }
0x2465   :  { %1530 = vrot.lane.b32.xlu2 %v1913_v56, %s2068_s21 }
0x2466   :  { %v1539_v57 = vpack.c.bf16 %v1097_v19, %v1097_v19 }
0x246d   :  { %1545 = vrot.lane.b32.xlu2 %v1539_v57, %s2078_s0 }
0x24bf   :  { %v1531_v0 = vpop.permute.xlu2 %1530 }
0x24c0   :  { %v1533_v3 = vmul.f32 %v1531_v0, %v1516_v31 }
0x24c2   :  { %v1534_v61 = vpack.c.bf16 %v1533_v3, %v1533_v3 }
0x24c4   :  { %1576 = vrot.lane.b32.xlu1 %v1534_v61, %s2078_s0 }
0x24c7   :  { %v1546_v4 = vpop.permute.xlu2 %1545 }
0x24c8   :  { %1758 = vmatmul.msk.bf16.vlgmr.msrb.gmra.mxu1 %vm372_vm7, %v1546_v4 }
0x2536   :  { %v1577_v10 = vpop.permute.xlu1 %1576 }
0x2537   :  { %1767 = vmatmul.msk.bf16.vlgmr.msra.gmra.mxu2 %vm372_vm7, %v1577_v10 }
0x2545   :  { %v1571_v11 = vpop.f32.mrf.mxu1 }
0x254d   :  { %v1573_v20 = vpop.f32.mrf.mxu1 }
0x25ba   :  { %v1602_v62 = vpop.f32.mrf.mxu2 }
0x25bb   :  { %v1603_v27 = vadd.f32 %v1602_v62, %v1571_v11 }
0x25bd   :  { %v1610_v1 = vadd.f32 %v1813_v22, %v1603_v27 }
0x25bf   :  { %1611 = vst [vmem:[%s2647_s14] sm:$0xff] %v1610_v1 }
0x25c2   :  { %v1604_v47 = vpop.f32.mrf.mxu2 }
0x25c3   :  { %1616 = vsyncpa [#allocation5], 1 }
0x25c4   :  { %1617 = vsyncpa [#allocation7], 1 }
0x25c5   :  { %1618 = vsyncpa [#allocation10], 1 }
0x25c6   :  { %1619 = vsyncpa [#allocation13], 1 }

</bundles_post_ra>
